<compile_context>
chip_gen: v7x
topology: tpu7x:2x2x1
jax: 0.10.0
libtpu: 0.0.40
codegen_flags: <defaults>
</compile_context>

<pallas_src>
import jax
import jax.numpy as jnp
from jax.experimental import pallas as pl
from jax.experimental.pallas import tpu as pltpu


def _make_block_kernel(cpg, eps, has_ss, Npad, Wp, HW):
    """Fused conv(3x3) + GroupNorm + SiLU body for one batch element."""
    inv_n = 1.0 / float(HW * cpg)

    def kernel(*refs):
        if has_ss:
            (x_ref, w_ref, cvec_ref, mask_ref, member_ref, membert_ref,
             ss_ref, o_ref) = refs
        else:
            (x_ref, w_ref, cvec_ref, mask_ref, member_ref, membert_ref,
             o_ref) = refs

        # ---- 3x3 conv: 3 shifted (Npad, 3*Cin) @ (3*Cin, Coutp) MXU dots ---
        # dx taps were folded into the channel axis by the wrapper; the ky
        # taps are static sublane shifts by multiples of Wp on the flat
        # zero-padded image.  bf16 operands, f32 accumulation.
        xf = x_ref[0]                                      # (NpadExt, 3*Cin) f32
        acc = None
        for ky in range(3):
            s = (ky + 1) * Wp                              # static row offset
            tap = xf[s:s + Npad, :].astype(jnp.bfloat16)   # (Npad, 3*Cin) bf16
            part = jnp.dot(tap, w_ref[ky],
                           preferred_element_type=jnp.float32)
            # TODO(synk): on v7x the partials could accumulate in the MXU
            # result buffer (MRB) instead of VPU adds.
            acc = part if acc is None else acc + part

        x = acc + cvec_ref[0:1, :]                         # conv bias (1, Coutp)

        # TODO(synk): data-dependent "std < 1e-6 -> add torch.randn_like noise"
        # branch of the source Block is not reproduced (host-side randomness).

        if has_ss:
            # NOTE: scale_shift applied pre-norm with clip(+-5), mirroring the
            # ported medseg.py Block (canonical diffusion Blocks apply it
            # post-norm).  TODO(synk): re-verify ordering against the source.
            scale = jnp.clip(ss_ref[0, 0:1, :], -5.0, 5.0)
            shift = jnp.clip(ss_ref[0, 1:2, :], -5.0, 5.0)
            x = x * (scale + 1.0) + shift

        # ---- GroupNorm: masked centered two-pass stats, VPU + sublane sums --
        mask = mask_ref[...]                               # (Npad, 1) valid-pixel
        member = member_ref[...]                           # (Coutp, G)
        member_t = membert_ref[...]                        # (G, Coutp)

        s_c = jnp.sum(x * mask, axis=0, keepdims=True)     # (1, Coutp)
        mean_g = jnp.dot(s_c, member,
                         preferred_element_type=jnp.float32) * inv_n   # (1, G)
        mean_c = jnp.dot(mean_g, member_t,
                         preferred_element_type=jnp.float32)           # (1, Cp)
        xc = x - mean_c
        ss_c = jnp.sum((xc * xc) * mask, axis=0, keepdims=True)
        var_g = jnp.dot(ss_c, member,
                        preferred_element_type=jnp.float32) * inv_n
        inv_g = jax.lax.rsqrt(var_g + eps)
        inv_c = jnp.dot(inv_g, member_t, preferred_element_type=jnp.float32)

        y = xc * inv_c * cvec_ref[1:2, :] + cvec_ref[2:3, :]

        # TODO(synk): post-norm NaN check + exit() of the source not reproduced.

        # ---- SiLU (bf16: EUP bf16 path on v6e/v7x; upcast on v5e) ----------
        yb = y.astype(jnp.bfloat16)
        o_ref[0] = (yb * jax.nn.sigmoid(yb)).astype(o_ref.dtype)

    return kernel


def _vmem_cap_bytes():
    """~3/4 of physical VMEM: ~96 MiB on v5e/v6e (128 MiB), ~48 MiB on v7x."""
    try:
        info = pltpu.get_tpu_info()
        cap = getattr(info, "vmem_capacity_bytes", None)
        if cap:
            return int(cap) * 3 // 4
    except Exception:
        pass
    return 48 << 20


def block_forward(x_nchw, params, groups=8, eps=1e-5, scale_shift=None):
    """Pallas implementation of Block.forward. x_nchw: (B, Cin, H, W)."""
    w, b, gamma, beta = params["w"], params["b"], params["gamma"], params["beta"]
    B, Cin, H, W = x_nchw.shape
    Cout = w.shape[0]
    assert Cout % groups == 0
    cpg = Cout // groups

    Wp = W + 2                         # conv-padded width
    Npad = (H + 2) * Wp                # flat conv-padded grid (= output rows)
    margin = 2                         # zero rows above/below for ky shifts
    NpadExt = (H + 2 + 2 * margin) * Wp
    Coutp = ((Cout + 127) // 128) * 128   # lane-dense output channel count
    # ky tap offsets are (ky+1)*Wp, ky in {0,1,2}; they must stay inside the
    # zero margin rows (ties the shift scheme to NpadExt).
    assert 3 * Wp + Npad <= NpadExt, "ky tap offsets exceed the zero margin"

    # --- prologue (small, Cin-sized): NCHW -> NHWC, zero-pad, fold dx taps ---
    x = jnp.transpose(x_nchw, (0, 2, 3, 1)).astype(jnp.float32)
    xp = jnp.pad(x, ((0, 0), (1 + margin, 1 + margin), (1, 1), (0, 0)))
    left = jnp.pad(xp[:, :, :-1, :], ((0, 0), (0, 0), (1, 0), (0, 0)))   # col c-1
    right = jnp.pad(xp[:, :, 1:, :], ((0, 0), (0, 0), (0, 1), (0, 0)))   # col c+1
    x3 = jnp.concatenate([left, xp, right], axis=-1)      # (B, Hext, Wp, 3*Cin)
    x_flat = x3.reshape(B, NpadExt, 3 * Cin)

    # conv weight (O, I, 3, 3) -> (ky, kx, I, O) -> (3, 3*I, Coutp) bf16;
    # kx folded into the contraction dim to match the wrapper's dx-concat.
    w_taps = jnp.transpose(w, (2, 3, 1, 0)).reshape(3, 3 * Cin, Cout)
    w_taps = jnp.pad(w_taps, ((0, 0), (0, 0), (0, Coutp - Cout)))
    w_taps = w_taps.astype(jnp.bfloat16)

    # packed per-channel constants: rows [bias, gamma, beta], zero-padded chans
    cvec = jnp.stack([b, gamma, beta], axis=0).astype(jnp.float32)
    cvec = jnp.pad(cvec, ((0, 0), (0, Coutp - Cout)))

    # valid-pixel column mask over the (H+2) x Wp flat grid
    rr = jnp.arange(H + 2)
    cc = jnp.arange(Wp)
    mask = ((rr[:, None] >= 1) & (rr[:, None] <= H) &
            (cc[None, :] >= 1) & (cc[None, :] <= W))
    mask = mask.reshape(Npad, 1).astype(jnp.float32)

    # channel -> group one-hot membership (padded channels belong to no group)
    gid = jnp.arange(Coutp) // cpg
    member = ((gid[:, None] == jnp.arange(groups)[None, :]) &
              (jnp.arange(Coutp)[:, None] < Cout)).astype(jnp.float32)
    member_t = member.T

    has_ss = scale_shift is not None
    inputs = [x_flat, w_taps, cvec, mask, member, member_t]
    in_specs = [
        pl.BlockSpec((1, NpadExt, 3 * Cin), lambda bi: (bi, 0, 0)),
        # grid-invariant constants: constant block indices -> fetched once
        pl.BlockSpec((3, 3 * Cin, Coutp), lambda bi: (0, 0, 0)),
        pl.BlockSpec((3, Coutp), lambda bi: (0, 0)),
        pl.BlockSpec((Npad, 1), lambda bi: (0, 0)),
        pl.BlockSpec((Coutp, groups), lambda bi: (0, 0)),
        pl.BlockSpec((groups, Coutp), lambda bi: (0, 0)),
    ]
    if has_ss:
        scale, shift = scale_shift
        ss = jnp.concatenate([scale.reshape(B, 1, Cout),
                              shift.reshape(B, 1, Cout)], axis=1)
        ss = jnp.pad(ss, ((0, 0), (0, 0), (0, Coutp - Cout))).astype(jnp.float32)
        inputs.append(ss)
        in_specs.append(pl.BlockSpec((1, 2, Coutp), lambda bi: (bi, 0, 0)))

    # VMEM budget: double-buffered I/O + resident constants + f32 temporaries
    bytes_in = NpadExt * 3 * Cin * 4
    bytes_out = Npad * Coutp * 2                     # bf16 output
    bytes_tmp = 6 * Npad * Coutp * 4                 # live f32 (Npad, Coutp) temps
    bytes_const = (3 * 3 * Cin * Coutp * 2 + 3 * Coutp * 4 + Npad * 4 +
                   2 * Coutp * groups * 4 + (2 * Coutp * 4 if has_ss else 0))
    est = 2 * (bytes_in + bytes_out) + bytes_const + bytes_tmp + (4 << 20)
    vmem_limit = int(min(_vmem_cap_bytes(), max(32 << 20, est)))

    kernel = _make_block_kernel(cpg, eps, has_ss, Npad, Wp, H * W)
    out = pl.pallas_call(
        kernel,
        out_shape=jax.ShapeDtypeStruct((B, Npad, Coutp), jnp.bfloat16),
        grid_spec=pltpu.PrefetchScalarGridSpec(
            num_scalar_prefetch=0,
            grid=(B,),
            in_specs=in_specs,
            out_specs=pl.BlockSpec((1, Npad, Coutp), lambda bi: (bi, 0, 0)),
        ),
        compiler_params=pltpu.CompilerParams(
            dimension_semantics=("parallel",),   # independent batch steps
            vmem_limit_bytes=vmem_limit),
    )(*inputs)

    # epilogue: drop padded border rows/cols and padded channels, back to NCHW
    out = out.reshape(B, H + 2, Wp, Coutp)[:, 1:H + 1, 1:W + 1, :Cout]
    return jnp.transpose(out, (0, 3, 1, 2))


def block_reference(x_nchw, params, groups=8, eps=1e-5, scale_shift=None):
    """Pure-JAX f32 reference (mirrors the ported PyTorch Block) for validation."""
    w, b, gamma, beta = params["w"], params["b"], params["gamma"], params["beta"]
    y = jax.lax.conv_general_dilated(
        x_nchw.astype(jnp.float32), w.astype(jnp.float32),
        window_strides=(1, 1), padding="SAME",
        dimension_numbers=("NCHW", "OIHW", "NCHW"))
    y = y + b[None, :, None, None]
    if scale_shift is not None:
        scale, shift = scale_shift
        scale = jnp.clip(scale, -5.0, 5.0)
        shift = jnp.clip(shift, -5.0, 5.0)
        y = y * (scale + 1.0) + shift
    B, C, H, W = y.shape
    yg = y.reshape(B, groups, C // groups, H, W)
    mean = yg.mean(axis=(2, 3, 4), keepdims=True)
    var = yg.var(axis=(2, 3, 4), keepdims=True)
    yn = ((yg - mean) * jax.lax.rsqrt(var + eps)).reshape(B, C, H, W)
    yn = yn * gamma[None, :, None, None] + beta[None, :, None, None]
    return yn * jax.nn.sigmoid(yn)


if __name__ == "__main__":
    B, Cin, Cout, H, W, groups = 2, 4, 8, 16, 16, 8
    key = jax.random.PRNGKey(0)
    k_x, k_w, k_b, k_s, k_t = jax.random.split(key, 5)

    x = jax.random.normal(k_x, (B, Cin, H, W), dtype=jnp.float32)
    params = {
        "w": jax.random.normal(k_w, (Cout, Cin, 3, 3), dtype=jnp.float32) * 0.1,
        "b": jax.random.normal(k_b, (Cout,), dtype=jnp.float32) * 0.1,
        "gamma": jnp.ones((Cout,), dtype=jnp.float32),
        "beta": jnp.zeros((Cout,), dtype=jnp.float32),
    }
    scale = jax.random.normal(k_s, (B, Cout, 1, 1), dtype=jnp.float32)
    shift = jax.random.normal(k_t, (B, Cout, 1, 1), dtype=jnp.float32)

    # scale_shift=None path (module default). Tolerances cover bf16 matmul
    # operands + bf16 output/SiLU vs the pure-f32 reference.
    out = block_forward(x, params, groups=groups)
    out = jax.block_until_ready(out)
    ref = block_reference(x, params, groups=groups)
    assert out.shape == (B, Cout, H, W)
    assert jnp.allclose(out.astype(jnp.float32), ref, atol=5e-2, rtol=5e-2)

    # scale_shift provided path
    out_ss = block_forward(x, params, groups=groups, scale_shift=(scale, shift))
    out_ss = jax.block_until_ready(out_ss)
    ref_ss = block_reference(x, params, groups=groups, scale_shift=(scale, shift))
    assert jnp.allclose(out_ss.astype(jnp.float32), ref_ss, atol=5e-2, rtol=5e-2)

    print("KERNEL_OK")
</pallas_src>

<mosaic_0001>
module attributes {stable_mosaic.version = 11 : i64} {
  func.func @kernel(%arg0: i32, %arg1: memref<1x396x12xf32, #tpu.memory_space<vmem>>, %arg2: memref<3x12x128xbf16, #tpu.memory_space<vmem>>, %arg3: memref<3x128xf32, #tpu.memory_space<vmem>>, %arg4: memref<324x1xf32, #tpu.memory_space<vmem>>, %arg5: memref<128x8xf32, #tpu.memory_space<vmem>>, %arg6: memref<8x128xf32, #tpu.memory_space<vmem>>, %arg7: memref<1x324x128xbf16, #tpu.memory_space<vmem>>) attributes {dimension_semantics = [#tpu.dimension_semantics<parallel>], iteration_bounds = array<i64: 2>, scalar_prefetch = 0 : i64, scratch_operands = 0 : i64, tpu.core_type = #tpu.core_type<tc>, window_params = [{transform_indices = @transform_0, window_bounds = array<i64: 1, 396, 12>}, {pipeline_mode = #tpu.pipeline_mode<synchronous>, transform_indices = @transform_1, window_bounds = array<i64: 3, 12, 128>}, {pipeline_mode = #tpu.pipeline_mode<synchronous>, transform_indices = @transform_2, window_bounds = array<i64: 3, 128>}, {pipeline_mode = #tpu.pipeline_mode<synchronous>, transform_indices = @transform_3, window_bounds = array<i64: 324, 1>}, {pipeline_mode = #tpu.pipeline_mode<synchronous>, transform_indices = @transform_4, window_bounds = array<i64: 128, 8>}, {pipeline_mode = #tpu.pipeline_mode<synchronous>, transform_indices = @transform_5, window_bounds = array<i64: 8, 128>}, {transform_indices = @transform_6, window_bounds = array<i64: 1, 324, 128>}]} {
    %c0 = arith.constant 0 : index
    %c0_0 = arith.constant 0 : index
    %c0_1 = arith.constant 0 : index
    %0 = vector.load %arg1[%c0, %c0_0, %c0_1] : memref<1x396x12xf32, #tpu.memory_space<vmem>>, vector<1x396x12xf32>
    %1 = vector.shape_cast %0 : vector<1x396x12xf32> to vector<396x12xf32>
    %2 = vector.extract_strided_slice %1 {offsets = [18, 0], sizes = [324, 12], strides = [1, 1]} : vector<396x12xf32> to vector<324x12xf32>
    %3 = arith.truncf %2 : vector<324x12xf32> to vector<324x12xbf16>
    %c0_2 = arith.constant 0 : index
    %c0_3 = arith.constant 0 : index
    %c0_4 = arith.constant 0 : index
    %4 = vector.load %arg2[%c0_2, %c0_3, %c0_4] : memref<3x12x128xbf16, #tpu.memory_space<vmem>>, vector<1x12x128xbf16>
    %5 = vector.shape_cast %4 : vector<1x12x128xbf16> to vector<12x128xbf16>
    %cst = arith.constant dense<0.000000e+00> : vector<324x128xf32>
    %6 = tpu.matmul %3, %5, %cst {dimension_numbers = #tpu.dot_dimension_numbers<[1], [0], [0], [1], [0, 0, 1, 1], [], []>} : vector<324x12xbf16>, vector<12x128xbf16>, vector<324x128xf32> -> vector<324x128xf32>
    %7 = vector.extract_strided_slice %1 {offsets = [36, 0], sizes = [324, 12], strides = [1, 1]} : vector<396x12xf32> to vector<324x12xf32>
    %8 = arith.truncf %7 : vector<324x12xf32> to vector<324x12xbf16>
    %c1 = arith.constant 1 : index
    %c0_5 = arith.constant 0 : index
    %c0_6 = arith.constant 0 : index
    %9 = vector.load %arg2[%c1, %c0_5, %c0_6] : memref<3x12x128xbf16, #tpu.memory_space<vmem>>, vector<1x12x128xbf16>
    %10 = vector.shape_cast %9 : vector<1x12x128xbf16> to vector<12x128xbf16>
    %cst_7 = arith.constant dense<0.000000e+00> : vector<324x128xf32>
    %11 = tpu.matmul %8, %10, %cst_7 {dimension_numbers = #tpu.dot_dimension_numbers<[1], [0], [0], [1], [0, 0, 1, 1], [], []>} : vector<324x12xbf16>, vector<12x128xbf16>, vector<324x128xf32> -> vector<324x128xf32>
    %12 = arith.addf %6, %11 : vector<324x128xf32>
    %13 = vector.extract_strided_slice %1 {offsets = [54, 0], sizes = [324, 12], strides = [1, 1]} : vector<396x12xf32> to vector<324x12xf32>
    %14 = arith.truncf %13 : vector<324x12xf32> to vector<324x12xbf16>
    %c2 = arith.constant 2 : index
    %c0_8 = arith.constant 0 : index
    %c0_9 = arith.constant 0 : index
    %15 = vector.load %arg2[%c2, %c0_8, %c0_9] : memref<3x12x128xbf16, #tpu.memory_space<vmem>>, vector<1x12x128xbf16>
    %16 = vector.shape_cast %15 : vector<1x12x128xbf16> to vector<12x128xbf16>
    %cst_10 = arith.constant dense<0.000000e+00> : vector<324x128xf32>
    %17 = tpu.matmul %14, %16, %cst_10 {dimension_numbers = #tpu.dot_dimension_numbers<[1], [0], [0], [1], [0, 0, 1, 1], [], []>} : vector<324x12xbf16>, vector<12x128xbf16>, vector<324x128xf32> -> vector<324x128xf32>
    %18 = arith.addf %12, %17 : vector<324x128xf32>
    %c0_11 = arith.constant 0 : index
    %c0_12 = arith.constant 0 : index
    %19 = vector.load %arg3[%c0_11, %c0_12] : memref<3x128xf32, #tpu.memory_space<vmem>>, vector<1x128xf32>
    %20 = vector.broadcast %19 : vector<1x128xf32> to vector<324x128xf32>
    %21 = arith.addf %18, %20 : vector<324x128xf32>
    %c0_13 = arith.constant 0 : index
    %c0_14 = arith.constant 0 : index
    %22 = vector.load %arg4[%c0_13, %c0_14] : memref<324x1xf32, #tpu.memory_space<vmem>>, vector<324x1xf32>
    %c0_15 = arith.constant 0 : index
    %c0_16 = arith.constant 0 : index
    %23 = vector.load %arg5[%c0_15, %c0_16] : memref<128x8xf32, #tpu.memory_space<vmem>>, vector<128x8xf32>
    %c0_17 = arith.constant 0 : index
    %c0_18 = arith.constant 0 : index
    %24 = vector.load %arg6[%c0_17, %c0_18] : memref<8x128xf32, #tpu.memory_space<vmem>>, vector<8x128xf32>
    %25 = vector.broadcast %22 : vector<324x1xf32> to vector<324x128xf32>
    %26 = arith.mulf %21, %25 : vector<324x128xf32>
    %cst_19 = arith.constant dense<0.000000e+00> : vector<128xf32>
    %27 = vector.multi_reduction <add>, %26, %cst_19 [0] : vector<324x128xf32> to vector<128xf32>
    %28 = vector.shape_cast %27 : vector<128xf32> to vector<1x128xf32>
    %cst_20 = arith.constant dense<0.000000e+00> : vector<1x8xf32>
    %29 = tpu.matmul %28, %23, %cst_20 {dimension_numbers = #tpu.dot_dimension_numbers<[1], [0], [0], [1], [0, 0, 1, 1], [], []>} : vector<1x128xf32>, vector<128x8xf32>, vector<1x8xf32> -> vector<1x8xf32>
    %cst_21 = arith.constant 3.906250e-03 : f32
    %30 = vector.broadcast %cst_21 : f32 to vector<1x8xf32>
    %31 = arith.mulf %29, %30 : vector<1x8xf32>
    %cst_22 = arith.constant dense<0.000000e+00> : vector<1x128xf32>
    %32 = tpu.matmul %31, %24, %cst_22 {dimension_numbers = #tpu.dot_dimension_numbers<[1], [0], [0], [1], [0, 0, 1, 1], [], []>} : vector<1x8xf32>, vector<8x128xf32>, vector<1x128xf32> -> vector<1x128xf32>
    %33 = vector.broadcast %32 : vector<1x128xf32> to vector<324x128xf32>
    %34 = arith.subf %21, %33 : vector<324x128xf32>
    %35 = arith.mulf %34, %34 : vector<324x128xf32>
    %36 = vector.broadcast %22 : vector<324x1xf32> to vector<324x128xf32>
    %37 = arith.mulf %35, %36 : vector<324x128xf32>
    %cst_23 = arith.constant dense<0.000000e+00> : vector<128xf32>
    %38 = vector.multi_reduction <add>, %37, %cst_23 [0] : vector<324x128xf32> to vector<128xf32>
    %39 = vector.shape_cast %38 : vector<128xf32> to vector<1x128xf32>
    %cst_24 = arith.constant dense<0.000000e+00> : vector<1x8xf32>
    %40 = tpu.matmul %39, %23, %cst_24 {dimension_numbers = #tpu.dot_dimension_numbers<[1], [0], [0], [1], [0, 0, 1, 1], [], []>} : vector<1x128xf32>, vector<128x8xf32>, vector<1x8xf32> -> vector<1x8xf32>
    %cst_25 = arith.constant 3.906250e-03 : f32
    %41 = vector.broadcast %cst_25 : f32 to vector<1x8xf32>
    %42 = arith.mulf %40, %41 : vector<1x8xf32>
    %cst_26 = arith.constant 9.99999974E-6 : f32
    %43 = vector.broadcast %cst_26 : f32 to vector<1x8xf32>
    %44 = arith.addf %42, %43 : vector<1x8xf32>
    %45 = math.rsqrt %44 : vector<1x8xf32>
    %cst_27 = arith.constant dense<0.000000e+00> : vector<1x128xf32>
    %46 = tpu.matmul %45, %24, %cst_27 {dimension_numbers = #tpu.dot_dimension_numbers<[1], [0], [0], [1], [0, 0, 1, 1], [], []>} : vector<1x8xf32>, vector<8x128xf32>, vector<1x128xf32> -> vector<1x128xf32>
    %47 = vector.broadcast %46 : vector<1x128xf32> to vector<324x128xf32>
    %48 = arith.mulf %34, %47 : vector<324x128xf32>
    %c1_28 = arith.constant 1 : index
    %c0_29 = arith.constant 0 : index
    %49 = vector.load %arg3[%c1_28, %c0_29] : memref<3x128xf32, #tpu.memory_space<vmem>>, vector<1x128xf32>
    %50 = vector.broadcast %49 : vector<1x128xf32> to vector<324x128xf32>
    %51 = arith.mulf %48, %50 : vector<324x128xf32>
    %c2_30 = arith.constant 2 : index
    %c0_31 = arith.constant 0 : index
    %52 = vector.load %arg3[%c2_30, %c0_31] : memref<3x128xf32, #tpu.memory_space<vmem>>, vector<1x128xf32>
    %53 = vector.broadcast %52 : vector<1x128xf32> to vector<324x128xf32>
    %54 = arith.addf %51, %53 : vector<324x128xf32>
    %55 = arith.truncf %54 : vector<324x128xf32> to vector<324x128xbf16>
    %56 = arith.negf %55 : vector<324x128xbf16>
    %57 = math.exp %56 : vector<324x128xbf16>
    %cst_32 = arith.constant 1.000000e+00 : bf16
    %58 = vector.broadcast %cst_32 : bf16 to vector<324x128xbf16>
    %59 = arith.addf %58, %57 : vector<324x128xbf16>
    %60 = arith.divf %58, %59 : vector<324x128xbf16>
    %61 = arith.mulf %55, %60 : vector<324x128xbf16>
    %c0_33 = arith.constant 0 : index
    %c0_34 = arith.constant 0 : index
    %c0_35 = arith.constant 0 : index
    %62 = vector.load %arg7[%c0_33, %c0_34, %c0_35] : memref<1x324x128xbf16, #tpu.memory_space<vmem>>, vector<1x324x128xbf16>
    %63 = vector.shape_cast %62 : vector<1x324x128xbf16> to vector<324x128xbf16>
    %64 = vector.shape_cast %61 : vector<324x128xbf16> to vector<1x324x128xbf16>
    tpu.vector_store %arg7[%c0_33, %c0_34, %c0_35], %64 {strides = array<i32>} : memref<1x324x128xbf16, #tpu.memory_space<vmem>>, vector<1x324x128xbf16>,
    return
  }
  func.func @transform_0(%arg0: i32) -> (i32, i32, i32) {
    %c0_i32 = arith.constant 0 : i32
    %c0_i32_0 = arith.constant 0 : i32
    %c0_i32_1 = arith.constant 0 : i32
    return %arg0, %c0_i32, %c0_i32_0 : i32, i32, i32
  }
  func.func @transform_1(%arg0: i32) -> (i32, i32, i32) {
    %c0_i32 = arith.constant 0 : i32
    %c0_i32_0 = arith.constant 0 : i32
    %c0_i32_1 = arith.constant 0 : i32
    %c0_i32_2 = arith.constant 0 : i32
    return %c0_i32, %c0_i32_0, %c0_i32_1 : i32, i32, i32
  }
  func.func @transform_2(%arg0: i32) -> (i32, i32) {
    %c0_i32 = arith.constant 0 : i32
    %c0_i32_0 = arith.constant 0 : i32
    %c0_i32_1 = arith.constant 0 : i32
    return %c0_i32, %c0_i32_0 : i32, i32
  }
  func.func @transform_3(%arg0: i32) -> (i32, i32) {
    %c0_i32 = arith.constant 0 : i32
    %c0_i32_0 = arith.constant 0 : i32
    %c0_i32_1 = arith.constant 0 : i32
    return %c0_i32, %c0_i32_0 : i32, i32
  }
  func.func @transform_4(%arg0: i32) -> (i32, i32) {
    %c0_i32 = arith.constant 0 : i32
    %c0_i32_0 = arith.constant 0 : i32
    %c0_i32_1 = arith.constant 0 : i32
    return %c0_i32, %c0_i32_0 : i32, i32
  }
  func.func @transform_5(%arg0: i32) -> (i32, i32) {
    %c0_i32 = arith.constant 0 : i32
    %c0_i32_0 = arith.constant 0 : i32
    %c0_i32_1 = arith.constant 0 : i32
    return %c0_i32, %c0_i32_0 : i32, i32
  }
  func.func @transform_6(%arg0: i32) -> (i32, i32, i32) {
    %c0_i32 = arith.constant 0 : i32
    %c0_i32_0 = arith.constant 0 : i32
    %c0_i32_1 = arith.constant 0 : i32
    return %arg0, %c0_i32, %c0_i32_0 : i32, i32, i32
  }
}

</mosaic_0001>

<bundles_post_ra>
// kernel: tpu_custom_call.1
= control target key start
LH: loop header
LB: loop body
LE: loop exit
PB: predicated region body
PF: predicated region fallthrough
CT: control target
= control target key end

     0   :  { %s3559_s21 = smov 0   ;;  %s5472_s0 = inlined_call_operand.vmem [shape: f32[2,396,12], index: 0, kind: input, shape index: {}]   ;;  %s5473_s1 = inlined_call_operand.vmem [shape: bf16[3,12,128], index: 1, kind: input, shape index: {}]   ;;  %s5474_s2 = inlined_call_operand.vmem [shape: f32[3,128], index: 2, kind: input, shape index: {}]   ;;  %s5475_s3 = inlined_call_operand.vmem [shape: f32[324,1], index: 3, kind: input, shape index: {}]   ;;  %s5476_s4 = inlined_call_operand.vmem [shape: f32[128,8], index: 4, kind: input, shape index: {}]   ;;  %s5477_s5 = inlined_call_operand.vmem [shape: f32[8,128], index: 5, kind: input, shape index: {}]   ;;  %s5478_s6 = inlined_call_operand.vmem [shape: bf16[2,324,128], index: 6, kind: output, shape index: {}]  }
   0x1 LB: > { %s2769_s22 = sadd.s32 4294967295, %s3518_s21   ;;  %p2773_p0 = scmp.ge.s32.totalorder %s3518_s21, 1  ;;  %s3518_s21 = sphi %s3559_s21, %s16_s21  }
   0x2   : > { %p212_p1 = scmp.lt.s32.totalorder %s3518_s21, 3 }
   0x4   : > { %p213_p2 = pnand %p2773_p0, %p212_p1 }
   0x6   : > { %216 = sbr.rel (%p213_p2) target bundleno = 1593 (0x639), region = 44 }
   0xd   : > { %vm349_vm0 = vcmask 1045504   ;;  %v5481_v0 = vmov 0.0   ;;  %v3423_v1 = vld [vmem:[%s5473_s1 + $0x8] sm:$0x3f]   ;;  %p242_p3 = scmp.lt.s32.totalorder %s2769_s22, 1  ;;  %vm3521_vm1 = vmmov 0  }
   0xe   : > { %3019 = vmatprep.subr.bf16.mxu0 %v5481_v0  ;;  %3405 = vmatprep.subr.bf16.mxu1 %v5481_v0  ;;  %v462_v2 = vsel %vm349_vm0, %v3423_v1, 0  ;;  %v3424_v3 = vld [vmem:[%s5473_s1 + $0x10] sm:$0x3f]   ;;  %v3425_v11 = vld [vmem:[%s5473_s1] sm:$0x3f]   ;;  %vm396_vm2 = vcmask 97280  }
   0xf   : > { %3021 = vmatprep.mubr.msk.bf16.mxu0 %vm3521_vm1, %v5481_v0  ;;  %3077 = vmatprep.mubr.msk.bf16.mxu1 %vm3521_vm1, %v5481_v0  ;;  %s5632_s22 = smov (!%p242_p3, %s2769_s22), 1  ;;  %v1097_v26 = vsel %vm349_vm0, %v3424_v3, 0  ;;  %v777_v34 = vsel %vm349_vm0, %v3425_v11, 0  ;;  %vm666_vm3 = vcmask 1046528   ;;  %vm986_vm4 = vcmask 1044480  }
  0x10   : > { %3020 = vmatpush3.bf16.msra.mxu0 %v462_v2  ;;  %3406 = vmatpush3.bf16.msra.mxu1 %v462_v2  ;;  %s3407_s25 = smul.u32 400, %s5632_s22  ;;  %vm1729_vm5 = vcmask 1043456   ;;  %vm1809_vm6 = vcmask 64512  }
  0x11   : > { %3191 = vmatprep.subr.bf16.mxu0 %v5481_v0  ;;  %3105 = vmatprep.subr.bf16.mxu1 %v5481_v0  ;;  %s3408_s26 = smul.u32 164, %s5632_s22 }
  0x12   : > { %s3585_s28 = scalar_lea.vmem %s5472_s0, %s3407_s25 }
  0x13   : > { %v256_v4 = vld [vmem:[%s3585_s28 + $0x20] sm:$0xff]  ;;  %v257_v5 = vld [vmem:[%s3585_s28 + $0x28] sm:$0xff]  ;;  %v258_v6 = vld [vmem:[%s3585_s28 + $0x30] sm:$0xff]  ;;  %s5406_s29 = scalar_lea.vmem %s5478_s6, %s3408_s26 }
  0x14   : > { %v259_v7 = vld [vmem:[%s3585_s28 + $0x38] sm:$0xff]  ;;  %v3594_v8 = vpack.c.bf16 %v257_v5, %v256_v4  ;;  %v284_v9 = vld [vmem:[%s3585_s28 + $0x100] sm:$0xff]  ;;  %v285_v10 = vld [vmem:[%s3585_s28 + $0x108] sm:$0xff] }
  0x15   : > { %v3601_v12 = vpack.c.bf16 %v259_v7, %v258_v6  ;;  %v286_v13 = vld [vmem:[%s3585_s28 + $0x110] sm:$0xff]  ;;  %v287_v14 = vld [vmem:[%s3585_s28 + $0x118] sm:$0xff]  ;;  %v3605_v15 = vpack.c.bf16 %v285_v10, %v284_v9  ;;  %v260_v16 = vld [vmem:[%s3585_s28 + $0x40] sm:$0xff] }
  0x16   : > { %v350_v17 = vrot.slane %v3594_v8, 2  ;;  %v3609_v18 = vpack.c.bf16 %v287_v14, %v286_v13  ;;  %v261_v19 = vld [vmem:[%s3585_s28 + $0x48] sm:$0xff]  ;;  %v288_v20 = vld [vmem:[%s3585_s28 + $0x120] sm:$0xff]  ;;  %v262_v28 = vld [vmem:[%s3585_s28 + $0x50] sm:$0xff] }
  0x17   : > { %v289_v21 = vld [vmem:[%s3585_s28 + $0x128] sm:$0xff]  ;;  %v351_v22 = vrot.slane %v3601_v12, 2  ;;  %v377_v23 = vrot.slane %v3605_v15, 2  ;;  %v3616_v24 = vpack.c.bf16 %v261_v19, %v260_v16  ;;  %v263_v29 = vld [vmem:[%s3585_s28 + $0x58] sm:$0xff]  ;;  %v290_v31 = vld [vmem:[%s3585_s28 + $0x130] sm:$0xff]  ;;  %v670_v58 = vrot.slane %v3601_v12, 1 }
  0x18   : > { %v379_v25 = vrot.slane %v3609_v18, 2  ;;  %v3620_v27 = vpack.c.bf16 %v289_v21, %v288_v20  ;;  %v291_v32 = vld [vmem:[%s3585_s28 + $0x138] sm:$0xff]  ;;  %v3634_v36 = vpack.c.bf16 %v263_v29, %v262_v28  ;;  %v264_v39 = vld [vmem:[%s3585_s28 + $0x60] sm:$0xff]  ;;  %v265_v40 = vld [vmem:[%s3585_s28 + $0x68] sm:$0xff]  ;;  %v987_v59 = vrot.slane %v3601_v12, 3 }
  0x19   : > { %v352_v30 = vsel %vm349_vm0, %v350_v17, %v351_v22  ;;  %v353_v35 = vrot.slane %v3616_v24, 2  ;;  %v3641_v38 = vpack.c.bf16 %v291_v32, %v290_v31  ;;  %v292_v41 = vld [vmem:[%s3585_s28 + $0x140] sm:$0xff]  ;;  %v293_v42 = vld [vmem:[%s3585_s28 + $0x148] sm:$0xff]  ;;  %v3651_v47 = vpack.c.bf16 %v265_v40, %v264_v39  ;;  %v266_v49 = vld [vmem:[%s3585_s28 + $0x70] sm:$0xff] }
  0x1a   : > { %3022 = vmatmul.mubr.msk.bf16.vlgmr.msra.gmra.mrb[0].mxu0 %vm396_vm2, %v352_v30  ;;  %v380_v33 = vsel %vm349_vm0, %v377_v23, %v379_v25  ;;  %v381_v37 = vrot.slane %v3620_v27, 2  ;;  %v355_v44 = vrot.slane %v3634_v36, 2  ;;  %v3653_v48 = vpack.c.bf16 %v293_v42, %v292_v41  ;;  %v267_v50 = vld [vmem:[%s3585_s28 + $0x78] sm:$0xff]  ;;  %v268_v51 = vld [vmem:[%s3585_s28 + $0x80] sm:$0xff]  ;;  %v269_v52 = vld [vmem:[%s3585_s28 + $0x88] sm:$0xff] }
  0x1b   : > { %3078 = vmatmul.mubr.msk.bf16.vlgmr.msra.gmra.mrb[0].mxu1 %vm396_vm2, %v380_v33  ;;  %3192 = vmatpush3.bf16.msra.mxu0 %v1097_v26  ;;  %v354_v43 = vsel %vm349_vm0, %v351_v22, %v353_v35  ;;  %v383_v46 = vrot.slane %v3641_v38, 2  ;;  %v270_v53 = vld [vmem:[%s3585_s28 + $0x90] sm:$0xff]  ;;  %v271_v54 = vld [vmem:[%s3585_s28 + $0x98] sm:$0xff]  ;;  %v272_v55 = vld [vmem:[%s3585_s28 + $0xa0] sm:$0xff]  ;;  %v3673_v61 = vpack.c.bf16 %v267_v50, %v266_v49  ;;  %v672_v63 = vrot.slane %v3616_v24, 1 }
  0x1c   : > { %3025 = vmatprep.mubr.msk.bf16.mxu0 %vm3521_vm1, %v5481_v0  ;;  %3081 = vmatprep.mubr.msk.bf16.mxu1 %vm3521_vm1, %v5481_v0  ;;  %v382_v45 = vsel %vm349_vm0, %v379_v25, %v381_v37  ;;  %v273_v56 = vld [vmem:[%s3585_s28 + $0xa8] sm:$0xff]  ;;  %v274_v57 = vld [vmem:[%s3585_s28 + $0xb0] sm:$0xff]  ;;  %v356_v60 = vsel %vm349_vm0, %v353_v35, %v355_v44  ;;  %v275_v62 = vld [vmem:[%s3585_s28 + $0xb8] sm:$0xff]  ;;  %v674_v1 = vrot.slane %v3634_v36, 1  ;;  %v357_v5 = vrot.slane %v3651_v47, 2 }
  0x1d   : > { %3106 = vmatpush3.bf16.msra.mxu1 %v777_v34  ;;  %v282_v2 = vld [vmem:[%s3585_s28 + $0xf0] sm:$0xff]  ;;  %v283_v3 = vld [vmem:[%s3585_s28 + $0xf8] sm:$0xff]  ;;  %v384_v4 = vsel %vm349_vm0, %v381_v37, %v383_v46  ;;  %v385_v6 = vrot.slane %v3653_v48, 2  ;;  %v3687_v7 = vpack.c.bf16 %v269_v52, %v268_v51  ;;  %v276_v9 = vld [vmem:[%s3585_s28 + $0xc0] sm:$0xff]  ;;  %v3691_v11 = vpack.c.bf16 %v271_v54, %v270_v53 }
  0x1e   : > { %v277_v10 = vld [vmem:[%s3585_s28 + $0xc8] sm:$0xff]  ;;  %v3696_v13 = vsel %vm666_vm3, %v670_v58, %v672_v63  ;;  %v278_v14 = vld [vmem:[%s3585_s28 + $0xd0] sm:$0xff]  ;;  %v279_v16 = vld [vmem:[%s3585_s28 + $0xd8] sm:$0xff]  ;;  %v3701_v17 = vsel %vm666_vm3, %v672_v63, %v674_v1  ;;  %v676_v19 = vrot.slane %v3651_v47, 1  ;;  %v3704_v20 = vpack.c.bf16 %v273_v56, %v272_v55 }
  0x1f   : > { %v3706_v21 = vpack.c.bf16 %v275_v62, %v274_v57  ;;  %v3708_v22 = vpack.c.bf16 %v283_v3, %v282_v2  ;;  %v678_v25 = vrot.slane %v3673_v61, 1  ;;  %v3711_v26 = vpack.c.bf16 %v277_v10, %v276_v9  ;;  %v280_v28 = vld [vmem:[%s3585_s28 + $0xe0] sm:$0xff]  ;;  %v281_v29 = vld [vmem:[%s3585_s28 + $0xe8] sm:$0xff]  ;;  %v3769_v57 = vld [vmem:[%s3585_s28 + $0x150] sm:$0xff] }
  0x20   : > { %v3716_v30 = vsel %vm666_vm3, %v674_v1, %v676_v19  ;;  %v680_v31 = vrot.slane %v3687_v7, 1  ;;  %v682_v32 = vrot.slane %v3691_v11, 1  ;;  %v3720_v33 = vpack.c.bf16 %v279_v16, %v278_v14  ;;  %v1386_v12 = vld [vmem:[%s5475_s3] sm:$0xff] }
  0x21   : > { %v375_v34 = vrot.slane %v3708_v22, 2  ;;  %v3724_v35 = vsel %vm666_vm3, %v676_v19, %v678_v25  ;;  %v988_v37 = vrot.slane %v3616_v24, 3  ;;  %v684_v41 = vrot.slane %v3704_v20, 1 }
  0x22   : > { %3026 = vmatmul.mubr.msk.bf16.gmra.mrb[4].mxu0 %vm396_vm2, %v354_v43  ;;  %v3728_v39 = vsel %vm666_vm3, %v678_v25, %v680_v31  ;;  %v3731_v40 = vsel %vm666_vm3, %v680_v31, %v682_v32  ;;  %v990_v42 = vrot.slane %v3634_v36, 3  ;;  %v3736_v43 = vpack.c.bf16 %v281_v29, %v280_v28  ;;  %v3818_v25 = vld [vmem:[%s3585_s28 + $0x160] sm:$0xff] }
  0x23   : > { %3082 = vmatmul.mubr.msk.bf16.gmra.mrb[4].mxu1 %vm396_vm2, %v382_v45  ;;  %3029 = vmatprep.mubr.msk.bf16.mxu0 %vm3521_vm1, %v5481_v0  ;;  %v3743_v24 = vsel %vm349_vm0, %v375_v34, %v377_v23  ;;  %v3746_v45 = vsel %vm986_vm4, %v987_v59, %v988_v37  ;;  %v686_v49 = vrot.slane %v3706_v21, 1  ;;  %v3753_v50 = vsel %vm666_vm3, %v682_v32, %v684_v41  ;;  %v295_v59 = vld [vmem:[%s3585_s28 + $0x158] sm:$0xff] }
  0x24   : > { %3085 = vmatprep.mubr.msk.bf16.mxu1 %vm3521_vm1, %v5481_v0  ;;  %v3756_v51 = vsel %vm986_vm4, %v988_v37, %v990_v42  ;;  %v992_v52 = vrot.slane %v3651_v47, 3  ;;  %v688_v23 = vrot.slane %v3711_v26, 1  ;;  %v994_v54 = vrot.slane %v3673_v61, 3 }
  0x25   : > { %v3763_v53 = vsel %vm666_vm3, %v684_v41, %v686_v49  ;;  %v690_v55 = vrot.slane %v3720_v33, 1  ;;  %v996_v56 = vrot.slane %v3687_v7, 3  ;;  %v692_v63 = vrot.slane %v3736_v43, 1 }
  0x26   : > { %v3776_v62 = vsel %vm666_vm3, %v686_v49, %v688_v23  ;;  %v3780_v1 = vsel %vm986_vm4, %v992_v52, %v994_v54  ;;  %v386_v10 = vsel %vm349_vm0, %v383_v46, %v385_v6  ;;  %v3802_v14 = vpack.c.bf16 %v295_v59, %v3769_v57 }
  0x27   : > { %v3783_v2 = vsel %vm666_vm3, %v688_v23, %v690_v55  ;;  %v3786_v3 = vsel %vm986_vm4, %v994_v54, %v996_v56  ;;  %v3794_v9 = vsel %vm666_vm3, %v690_v55, %v692_v63  ;;  %v998_v16 = vrot.slane %v3691_v11, 3  ;;  %v255_v23 = vld [vmem:[%s3585_s28 + $0x18] sm:$0xff] }
  0x28   : > { %v387_v46 = vrot.slane %v3802_v14, 2  ;;  %v694_v19 = vrot.slane %v3708_v22, 1  ;;  %v324_v31 = vpack.c.bf16 %v3818_v25, %v3818_v25  ;;  %v1000_v32 = vrot.slane %v3704_v20, 3 }
  0x29   : > { %v3807_v36 = vsel %vm986_vm4, %v996_v56, %v998_v16  ;;  %v361_v47 = vrot.slane %v3687_v7, 2  ;;  %v363_v7 = vrot.slane %v3691_v11, 2  ;;  %v1004_v56 = vrot.slane %v3711_v26, 3 }
  0x2a   : > { %3030 = vmatmul.mubr.msk.bf16.gmra.mrb[8].mxu0 %vm396_vm2, %v356_v60  ;;  %v3773_v60 = vsel %vm986_vm4, %v990_v42, %v992_v52  ;;  %v3823_v28 = vsel %vm666_vm3, %v692_v63, %v694_v19  ;;  %v3836_v37 = vsel %vm986_vm4, %v998_v16, %v1000_v32  ;;  %v1002_v42 = vrot.slane %v3706_v21, 3  ;;  %v254_v52 = vld [vmem:[%s3585_s28 + $0x10] sm:$0xff] }
  0x2b   : > { %3086 = vmatmul.mubr.msk.bf16.gmra.mrb[8].mxu1 %vm396_vm2, %v384_v4  ;;  %3033 = vmatprep.mubr.msk.bf16.mxu0 %vm3521_vm1, %v5481_v0  ;;  %v358_v4 = vsel %vm349_vm0, %v355_v44, %v357_v5  ;;  %v359_v44 = vrot.slane %v3673_v61, 2  ;;  %v388_v61 = vsel %vm349_vm0, %v385_v6, %v387_v46  ;;  %v364_v54 = vsel %vm349_vm0, %v361_v47, %v363_v7 }
  0x2c   : > { %3089 = vmatprep.mubr.msk.bf16.mxu1 %vm3521_vm1, %v5481_v0  ;;  %v3849_v49 = vsel %vm986_vm4, %v1000_v32, %v1002_v42  ;;  %v300_v55 = vpack.c.bf16 %v255_v23, %v254_v52  ;;  %v3863_v59 = vsel %vm986_vm4, %v1002_v42, %v1004_v56  ;;  %v365_v11 = vrot.slane %v3704_v20, 2  ;;  %v1392_v52 = vld [vmem:[%s5475_s3 + $0x30] sm:$0xff]  ;;  %v1391_v23 = vld [vmem:[%s5475_s3 + $0x28] sm:$0xff] }
  0x2d   : > { %v360_v29 = vsel %vm349_vm0, %v357_v5, %v359_v44  ;;  %v389_v5 = vrot.slane %v324_v31, 2  ;;  %v362_v6 = vsel %vm349_vm0, %v359_v44, %v361_v47  ;;  %v668_v63 = vrot.slane %v3594_v8, 1 }
  0x2e   : > { %v1006_v44 = vrot.slane %v3720_v33, 3  ;;  %v367_v8 = vrot.slane %v3706_v21, 2  ;;  %v369_v21 = vrot.slane %v3711_v26, 2  ;;  %v1010_v47 = vrot.slane %v3708_v22, 3 }
  0x2f   : > { %v390_v41 = vsel %vm349_vm0, %v387_v46, %v389_v5 }
  0x30   : > { %v3877_v46 = vsel %vm986_vm4, %v1004_v56, %v1006_v44  ;;  %v368_v20 = vsel %vm349_vm0, %v365_v11, %v367_v8  ;;  %v370_v32 = vsel %vm349_vm0, %v367_v8, %v369_v21  ;;  %v1395_v56 = vld [vmem:[%s5475_s3 + $0x48] sm:$0xff]  ;;  %v1408_v8 = vld [vmem:[%s5475_s3 + $0xb0] sm:$0xff] }
  0x32   : > { %3034 = vmatmul.mubr.msk.bf16.gmra.mrb[12].mxu0 %vm396_vm2, %v358_v4  ;;  %v667_v4 = vrot.slane %v300_v55, 1  ;;  %v1396_v55 = vld [vmem:[%s5475_s3 + $0x50] sm:$0xff] }
  0x33   : > { %3090 = vmatmul.mubr.msk.bf16.gmra.mrb[12].mxu1 %vm396_vm2, %v386_v10  ;;  %3037 = vmatprep.mubr.msk.bf16.mxu0 %vm3521_vm1, %v5481_v0  ;;  %v366_v10 = vsel %vm349_vm0, %v363_v7, %v365_v11  ;;  %v1389_v7 = vld [vmem:[%s5475_s3 + $0x18] sm:$0xff]  ;;  %v1398_v11 = vld [vmem:[%s5475_s3 + $0x60] sm:$0xff] }
  0x34   : > { %3093 = vmatprep.mubr.msk.bf16.mxu1 %vm3521_vm1, %v5481_v0  ;;  %v669_v16 = vsel %vm666_vm3, %v667_v4, %v668_v63  ;;  %v1399_v4 = vld [vmem:[%s5475_s3 + $0x68] sm:$0xff] }
  0x3a   : > { %3038 = vmatmul.mubr.msk.bf16.gmra.mrb[16].mxu0 %vm396_vm2, %v360_v29  ;;  %v671_v29 = vsel %vm666_vm3, %v668_v63, %v670_v58  ;;  %v3522_v58 = vmov 0   ;;  %v1397_v63 = vld [vmem:[%s5475_s3 + $0x58] sm:$0xff] }
  0x3b   : > { %3094 = vmatmul.mubr.msk.bf16.gmra.mrb[16].mxu1 %vm396_vm2, %v388_v61  ;;  %3041 = vmatprep.mubr.msk.bf16.mxu0 %vm3521_vm1, %v5481_v0  ;;  %v1008_v61 = vrot.slane %v3736_v43, 3 }
  0x3c   : > { %3097 = vmatprep.mubr.msk.bf16.mxu1 %vm3521_vm1, %v5481_v0  ;;  %3421 = vset.pattern.permute.xlu0 %v3522_v58 }
  0x3d   : > { %v3892_v31 = vsel %vm986_vm4, %v1006_v44, %v1008_v61  ;;  %1446 = vperm.xlu0 %3421, %v1386_v12   ;;  %3422 = vset.pattern.permute.xlu1 %v3522_v58  ;;  %v3909_v26 = vsel %vm986_vm4, %v1008_v61, %v1010_v47  ;;  %v1406_v44 = vld [vmem:[%s5475_s3 + $0xa0] sm:$0xff]  ;;  %v1420_v58 = vld [vmem:[%s5475_s3 + $0x110] sm:$0xff] }
  0x3e   : > { %v1414_v61 = vld [vmem:[%s5475_s3 + $0xe0] sm:$0xff] }
  0x3f   : > { %v1418_v12 = vld [vmem:[%s5475_s3 + $0x100] sm:$0xff] }
  0x42   : > { %3042 = vmatmul.mubr.msk.bf16.gmra.mrb[20].mxu0 %vm396_vm2, %v362_v6  ;;  %v1387_v6 = vld [vmem:[%s5475_s3 + $0x8] sm:$0xff] }
  0x43   : > { %3098 = vmatmul.mubr.msk.bf16.gmra.mrb[20].mxu1 %vm396_vm2, %v390_v41  ;;  %3045 = vmatprep.mubr.msk.bf16.mxu0 %vm3521_vm1, %v5481_v0  ;;  %v1388_v41 = vld [vmem:[%s5475_s3 + $0x10] sm:$0xff] }
  0x44   : > { %3101 = vmatprep.mubr.msk.bf16.mxu1 %vm3521_vm1, %v5481_v0  ;;  %1451 = vperm.xlu0 %3421, %v1387_v6   ;;  %v1425_v6 = vld [vmem:[%s5475_s3 + $0x138] sm:$0xff] }
  0x45   : > { %1456 = vperm.xlu1 %3422, %v1388_v41  }
  0x49   : > { %1461 = vperm.xlu1 %3422, %v1389_v7  }
  0x4a   : > { %3046 = vmatmul.mubr.msk.bf16.gmra.mrb[24].mxu0 %vm396_vm2, %v364_v54  ;;  %v1393_v54 = vld [vmem:[%s5475_s3 + $0x38] sm:$0xff] }
  0x4b   : > { %3102 = vmatmul.mubr.msk.bf16.gmra.mrb[24].mxu1 %vm396_vm2, %v389_v5  ;;  %3049 = vmatprep.mubr.msk.bf16.mxu0 %vm3521_vm1, %v5481_v0  ;;  %v371_v5 = vrot.slane %v3720_v33, 2  ;;  %v373_v33 = vrot.slane %v3736_v43, 2  ;;  %v1394_v43 = vld [vmem:[%s5475_s3 + $0x40] sm:$0xff] }
  0x4c   : > { %3107 = vmatprep.mubr.msk.bf16.mxu1 %vm3521_vm1, %v5481_v0 }
  0x4d   : > { %v372_v42 = vsel %vm349_vm0, %v369_v21, %v371_v5  ;;  %1471 = vperm.xlu1 %3422, %v1391_v23   ;;  %v1416_v21 = vld [vmem:[%s5475_s3 + $0xf0] sm:$0xff]  ;;  %v1428_v23 = vld [vmem:[%s5476_s4 + $0x8] sm:$0xff] }
  0x51   : > { %1481 = vperm.xlu1 %3422, %v1393_v54  }
  0x52   : > { %3050 = vmatmul.mubr.msk.bf16.gmra.mrb[28].mxu0 %vm396_vm2, %v366_v10  ;;  %v1402_v10 = vld [vmem:[%s5475_s3 + $0x80] sm:$0xff] }
  0x53   : > { %3108 = vmatmul.mubr.msk.bf16.vlgmr.msra.gmra.mrb[28].mxu1 %vm396_vm2, %v669_v16  ;;  %3053 = vmatprep.mubr.msk.bf16.mxu0 %vm3521_vm1, %v5481_v0  ;;  %v1404_v16 = vld [vmem:[%s5475_s3 + $0x90] sm:$0xff] }
  0x54   : > { %3111 = vmatprep.mubr.msk.bf16.mxu1 %vm3521_vm1, %v5481_v0 }
  0x55   : > { %1491 = vperm.xlu1 %3422, %v1395_v56  }
  0x59   : > { %1501 = vperm.xlu1 %3422, %v1397_v63   ;;  %v1016_v63 = vrot.slane %v3620_v27, 3 }
  0x5a   : > { %3054 = vmatmul.mubr.msk.bf16.gmra.mrb[32].mxu0 %vm396_vm2, %v368_v20  ;;  %v1410_v20 = vld [vmem:[%s5475_s3 + $0xc0] sm:$0xff] }
  0x5b   : > { %3112 = vmatmul.mubr.msk.bf16.gmra.mrb[32].mxu1 %vm396_vm2, %v671_v29  ;;  %3057 = vmatprep.mubr.msk.bf16.mxu0 %vm3521_vm1, %v5481_v0  ;;  %v1412_v29 = vld [vmem:[%s5475_s3 + $0xd0] sm:$0xff] }
  0x5c   : > { %3115 = vmatprep.mubr.msk.bf16.mxu1 %vm3521_vm1, %v5481_v0 }
  0x5d   : > { %1511 = vperm.xlu1 %3422, %v1399_v4  }
  0x62   : > { %3058 = vmatmul.mubr.msk.bf16.gmra.mrb[36].mxu0 %vm396_vm2, %v370_v32  ;;  %v1422_v32 = vld [vmem:[%s5475_s3 + $0x120] sm:$0xff] }
  0x63   : > { %3116 = vmatmul.mubr.msk.bf16.gmra.mrb[36].mxu1 %vm396_vm2, %v3696_v13  ;;  %3061 = vmatprep.mubr.msk.bf16.mxu0 %vm3521_vm1, %v5481_v0  ;;  %v1390_v13 = vld [vmem:[%s5475_s3 + $0x20] sm:$0xff] }
  0x64   : > { %3119 = vmatprep.mubr.msk.bf16.mxu1 %vm3521_vm1, %v5481_v0  ;;  %1466 = vperm.xlu0 %3421, %v1390_v13  }
  0x68   : > { %1476 = vperm.xlu0 %3421, %v1392_v52   ;;  %v5479_v52 = vmov 0.0|0.0  }
  0x69   : > { %3357 = vmatprep.subr.bf16.mxu1 %v5479_v52 }
  0x6a   : > { %3062 = vmatmul.mubr.msk.bf16.gmra.mrb[40].mxu0 %vm396_vm2, %v372_v42  ;;  %v320_v42 = vpack.c.bf16 %v3769_v57, %v3769_v57 }
  0x6b   : > { %3120 = vmatmul.mubr.msk.bf16.gmra.mrb[40].mxu1 %vm396_vm2, %v3701_v17  ;;  %3065 = vmatprep.mubr.msk.bf16.mxu0 %vm3521_vm1, %v5481_v0  ;;  %v374_v17 = vsel %vm349_vm0, %v371_v5, %v373_v33  ;;  %v1424_v5 = vld [vmem:[%s5475_s3 + $0x130] sm:$0xff] }
  0x6c   : > { %3123 = vmatprep.mubr.msk.bf16.mxu1 %vm3521_vm1, %v5481_v0  ;;  %1486 = vperm.xlu0 %3421, %v1394_v43  }
  0x70   : > { %1496 = vperm.xlu0 %3421, %v1396_v55  }
  0x72   : > { %3066 = vmatmul.mubr.msk.bf16.gmra.mrb[44].mxu0 %vm396_vm2, %v374_v17  ;;  %v1427_v17 = vld [vmem:[%s5476_s4] sm:$0xff] }
  0x73   : > { %3124 = vmatmul.mubr.msk.bf16.gmra.mrb[44].mxu1 %vm396_vm2, %v3716_v30  ;;  %3069 = vmatprep.mubr.msk.bf16.mxu0 %vm3521_vm1, %v5481_v0  ;;  %v376_v30 = vsel %vm349_vm0, %v373_v33, %v375_v34  ;;  %v1400_v34 = vld [vmem:[%s5475_s3 + $0x70] sm:$0xff]  ;;  %v706_v33 = vrot.slane %v320_v42, 1  ;;  %v4204_v55 = vpack.c.bf16 %v1428_v23, %v1427_v17 }
  0x74   : > { %3127 = vmatprep.mubr.msk.bf16.mxu1 %vm3521_vm1, %v5481_v0  ;;  %1506 = vperm.xlu0 %3421, %v1398_v11  }
  0x75   : > { %3359 = vmatpush3.bf16.msra.mxu1 %v4204_v55 }
  0x76   : > { %3360 = vmatprep.subr.bf16.mxu1 %v5479_v52 }
  0x78   : > { %1516 = vperm.xlu0 %3421, %v1400_v34  }
  0x7a   : > { %3070 = vmatmul.mubr.msk.bf16.gmra.mrb[48].mxu0 %vm396_vm2, %v376_v30 }
  0x7b   : > { %3128 = vmatmul.mubr.msk.bf16.gmra.mrb[48].mxu1 %vm396_vm2, %v3724_v35  ;;  %3073 = vmatprep.mubr.msk.bf16.mxu0 %vm3521_vm1, %v5481_v0  ;;  %v1401_v35 = vld [vmem:[%s5475_s3 + $0x78] sm:$0xff] }
  0x7c   : > { %3131 = vmatprep.mubr.msk.bf16.mxu1 %vm3521_vm1, %v5481_v0  ;;  %1526 = vperm.xlu0 %3421, %v1402_v10  }
  0x7d   : > { %1521 = vperm.xlu1 %3422, %v1401_v35  }
  0x80   : > { %1536 = vperm.xlu0 %3421, %v1404_v16  }
  0x82   : > { %3074 = vmatmul.mubr.msk.bf16.gmra.mrb[52].mxu0 %vm396_vm2, %v3743_v24  ;;  %v1403_v24 = vld [vmem:[%s5475_s3 + $0x88] sm:$0xff] }
  0x83   : > { %3132 = vmatmul.mubr.msk.bf16.gmra.mrb[52].mxu1 %vm396_vm2, %v3728_v39  ;;  %3193 = vmatprep.mubr.msk.bf16.mxu0 %vm3521_vm1, %v5481_v0  ;;  %v1405_v39 = vld [vmem:[%s5475_s3 + $0x98] sm:$0xff] }
  0x84   : > { %3135 = vmatprep.mubr.msk.bf16.mxu1 %vm3521_vm1, %v5481_v0  ;;  %1531 = vperm.xlu1 %3422, %v1403_v24  }
  0x85   : > { %1546 = vperm.xlu0 %3421, %v1406_v44  }
  0x88   : > { %1541 = vperm.xlu1 %3422, %v1405_v39  }
  0x89   : > { %1556 = vperm.xlu0 %3421, %v1408_v8  }
  0x8a   : > { %3194 = vmatmul.mubr.msk.bf16.vlgmr.msra.gmra.mrb[56].mxu0 %vm396_vm2, %v3746_v45  ;;  %v1407_v45 = vld [vmem:[%s5475_s3 + $0xa8] sm:$0xff] }
  0x8b   : > { %3136 = vmatmul.mubr.msk.bf16.gmra.mrb[56].mxu1 %vm396_vm2, %v3731_v40  ;;  %3197 = vmatprep.mubr.msk.bf16.mxu0 %vm3521_vm1, %v5481_v0  ;;  %v1409_v40 = vld [vmem:[%s5475_s3 + $0xb8] sm:$0xff] }
  0x8c   : > { %3139 = vmatprep.mubr.msk.bf16.mxu1 %vm3521_vm1, %v5481_v0  ;;  %1551 = vperm.xlu1 %3422, %v1407_v45  }
  0x8d   : > { %1566 = vperm.xlu0 %3421, %v1410_v20  }
  0x90   : > { %1561 = vperm.xlu1 %3422, %v1409_v40  }
  0x91   : > { %1576 = vperm.xlu0 %3421, %v1412_v29  }
  0x92   : > { %3198 = vmatmul.mubr.msk.bf16.gmra.mrb[60].mxu0 %vm396_vm2, %v3756_v51  ;;  %v1411_v51 = vld [vmem:[%s5475_s3 + $0xc8] sm:$0xff] }
  0x93   : > { %3140 = vmatmul.mubr.msk.bf16.gmra.mrb[60].mxu1 %vm396_vm2, %v3753_v50  ;;  %3201 = vmatprep.mubr.msk.bf16.mxu0 %vm3521_vm1, %v5481_v0  ;;  %v1413_v50 = vld [vmem:[%s5475_s3 + $0xd8] sm:$0xff] }
  0x94   : > { %3143 = vmatprep.mubr.msk.bf16.mxu1 %vm3521_vm1, %v5481_v0  ;;  %1571 = vperm.xlu1 %3422, %v1411_v51  }
  0x95   : > { %1586 = vperm.xlu0 %3421, %v1414_v61  }
  0x98   : > { %1581 = vperm.xlu1 %3422, %v1413_v50  }
  0x99   : > { %1596 = vperm.xlu0 %3421, %v1416_v21  }
  0x9a   : > { %3202 = vmatmul.mubr.msk.bf16.gmra.mrb[64].mxu0 %vm396_vm2, %v3773_v60  ;;  %v1415_v60 = vld [vmem:[%s5475_s3 + $0xe8] sm:$0xff] }
  0x9b   : > { %3144 = vmatmul.mubr.msk.bf16.gmra.mrb[64].mxu1 %vm396_vm2, %v3763_v53  ;;  %3205 = vmatprep.mubr.msk.bf16.mxu0 %vm3521_vm1, %v5481_v0  ;;  %v1417_v53 = vld [vmem:[%s5475_s3 + $0xf8] sm:$0xff] }
  0x9c   : > { %3147 = vmatprep.mubr.msk.bf16.mxu1 %vm3521_vm1, %v5481_v0  ;;  %1591 = vperm.xlu1 %3422, %v1415_v60  }
  0x9d   : > { %1606 = vperm.xlu0 %3421, %v1418_v12  }
  0xa0   : > { %1601 = vperm.xlu1 %3422, %v1417_v53  }
  0xa1   : > { %1616 = vperm.xlu0 %3421, %v1420_v58  }
  0xa2   : > { %3206 = vmatmul.mubr.msk.bf16.gmra.mrb[68].mxu0 %vm396_vm2, %v3780_v1  ;;  %v1419_v1 = vld [vmem:[%s5475_s3 + $0x108] sm:$0xff] }
  0xa3   : > { %3148 = vmatmul.mubr.msk.bf16.gmra.mrb[68].mxu1 %vm396_vm2, %v3776_v62  ;;  %3209 = vmatprep.mubr.msk.bf16.mxu0 %vm3521_vm1, %v5481_v0  ;;  %v1421_v62 = vld [vmem:[%s5475_s3 + $0x118] sm:$0xff] }
  0xa4   : > { %3151 = vmatprep.mubr.msk.bf16.mxu1 %vm3521_vm1, %v5481_v0  ;;  %1611 = vperm.xlu1 %3422, %v1419_v1   ;;  %v1429_v1 = vld [vmem:[%s5476_s4 + $0x10] sm:$0xff] }
  0xa5   : > { %1626 = vperm.xlu0 %3421, %v1422_v32   ;;  %v1430_v32 = vld [vmem:[%s5476_s4 + $0x18] sm:$0xff] }
  0xa8   : > { %1621 = vperm.xlu1 %3422, %v1421_v62  }
  0xa9   : > { %1636 = vperm.xlu0 %3421, %v1424_v5  }
  0xaa   : > { %3210 = vmatmul.mubr.msk.bf16.gmra.mrb[72].mxu0 %vm396_vm2, %v3786_v3  ;;  %v1426_v3 = vld [vmem:[%s5475_s3 + $0x140] sm:$0xf] }
  0xab   : > { %3152 = vmatmul.mubr.msk.bf16.gmra.mrb[72].mxu1 %vm396_vm2, %v3783_v2  ;;  %3213 = vmatprep.mubr.msk.bf16.mxu0 %vm3521_vm1, %v5481_v0  ;;  %v1423_v2 = vld [vmem:[%s5475_s3 + $0x128] sm:$0xff] }
  0xac   : > { %3155 = vmatprep.mubr.msk.bf16.mxu1 %vm3521_vm1, %v5481_v0  ;;  %1631 = vperm.xlu1 %3422, %v1423_v2  }
  0xad   : > { %1646 = vperm.xlu0 %3421, %v1426_v3  }
  0xb0   : > { %1641 = vperm.xlu1 %3422, %v1425_v6  }
  0xb2   : > { %3214 = vmatmul.mubr.msk.bf16.gmra.mrb[76].mxu0 %vm396_vm2, %v3807_v36 }
  0xb3   : > { %3156 = vmatmul.mubr.msk.bf16.gmra.mrb[76].mxu1 %vm396_vm2, %v3794_v9  ;;  %3217 = vmatprep.mubr.msk.bf16.mxu0 %vm3521_vm1, %v5481_v0  ;;  %v696_v9 = vrot.slane %v3605_v15, 1 }
  0xb4   : > { %3159 = vmatprep.mubr.msk.bf16.mxu1 %vm3521_vm1, %v5481_v0 }
  0xb5   : > { %v697_v36 = vsel %vm666_vm3, %v694_v19, %v696_v9  ;;  %v700_v19 = vrot.slane %v3620_v27, 1  ;;  %v1018_v27 = vrot.slane %v3641_v38, 3 }
  0xb7   : > { %v1019_v51 = vsel %vm986_vm4, %v1016_v63, %v1018_v27 }
  0xba   : > { %3218 = vmatmul.mubr.msk.bf16.gmra.mrb[80].mxu0 %vm396_vm2, %v3836_v37 }
  0xbb   : > { %3160 = vmatmul.mubr.msk.bf16.gmra.mrb[80].mxu1 %vm396_vm2, %v3823_v28  ;;  %3221 = vmatprep.mubr.msk.bf16.mxu0 %vm3521_vm1, %v5481_v0  ;;  %v698_v28 = vrot.slane %v3609_v18, 1 }
  0xbc   : > { %3163 = vmatprep.mubr.msk.bf16.mxu1 %vm3521_vm1, %v5481_v0 }
  0xbd   : > { %v699_v37 = vsel %vm666_vm3, %v696_v9, %v698_v28 }
  0xc2   : > { %3222 = vmatmul.mubr.msk.bf16.gmra.mrb[84].mxu0 %vm396_vm2, %v3849_v49  ;;  %v701_v49 = vsel %vm666_vm3, %v698_v28, %v700_v19  ;;  %v297_v28 = vld [vmem:[%s3585_s28 + $0x168] sm:$0xff] }
  0xc3   : > { %3164 = vmatmul.mubr.msk.bf16.gmra.mrb[84].mxu1 %vm396_vm2, %v697_v36  ;;  %3225 = vmatprep.mubr.msk.bf16.mxu0 %vm3521_vm1, %v5481_v0  ;;  %v1022_v36 = vrot.slane %v3802_v14, 3 }
  0xc4   : > { %3167 = vmatprep.mubr.msk.bf16.mxu1 %vm3521_vm1, %v5481_v0 }
  0xca   : > { %3226 = vmatmul.mubr.msk.bf16.gmra.mrb[88].mxu0 %vm396_vm2, %v3863_v59  ;;  %v702_v59 = vrot.slane %v3641_v38, 1  ;;  %v1020_v38 = vrot.slane %v3653_v48, 3 }
  0xcb   : > { %3168 = vmatmul.mubr.msk.bf16.gmra.mrb[88].mxu1 %vm396_vm2, %v699_v37  ;;  %3229 = vmatprep.mubr.msk.bf16.mxu0 %vm3521_vm1, %v5481_v0 }
  0xcc   : > { %3171 = vmatprep.mubr.msk.bf16.mxu1 %vm3521_vm1, %v5481_v0  ;;  %v703_v41 = vsel %vm666_vm3, %v700_v19, %v702_v59  ;;  %v1021_v5 = vsel %vm986_vm4, %v1018_v27, %v1020_v38 }
  0xd2   : > { %3230 = vmatmul.mubr.msk.bf16.gmra.mrb[92].mxu0 %vm396_vm2, %v3877_v46  ;;  %v704_v46 = vrot.slane %v3653_v48, 1  ;;  %v4256_v48 = vpack.c.bf16 %v1430_v32, %v1429_v1 }
  0xd3   : > { %3172 = vmatmul.mubr.msk.bf16.gmra.mrb[92].mxu1 %vm396_vm2, %v701_v49  ;;  %3233 = vmatprep.mubr.msk.bf16.mxu0 %vm3521_vm1, %v5481_v0 }
  0xd4   : > { %3175 = vmatprep.mubr.msk.bf16.mxu1 %vm3521_vm1, %v5481_v0  ;;  %v705_v13 = vsel %vm666_vm3, %v702_v59, %v704_v46  ;;  %v707_v57 = vsel %vm666_vm3, %v704_v46, %v706_v33  ;;  %3362 = vmatpush3.bf16.msra.mxu1 %v4256_v48 }
  0xd5   : > { %3363 = vmatprep.subr.bf16.mxu1 %v5479_v52 }
  0xda   : > { %3234 = vmatmul.mubr.msk.bf16.gmra.mrb[96].mxu0 %vm396_vm2, %v3892_v31  ;;  %v1012_v31 = vrot.slane %v3605_v15, 3 }
  0xdb   : > { %3176 = vmatmul.mubr.msk.bf16.gmra.mrb[96].mxu1 %vm396_vm2, %v703_v41  ;;  %3237 = vmatprep.mubr.msk.bf16.mxu0 %vm3521_vm1, %v5481_v0  ;;  %v1023_v41 = vsel %vm986_vm4, %v1020_v38, %v1022_v36 }
  0xdc   : > { %3179 = vmatprep.mubr.msk.bf16.mxu1 %vm3521_vm1, %v5481_v0  ;;  %v1013_v7 = vsel %vm986_vm4, %v1010_v47, %v1012_v31 }
  0xe2   : > { %3238 = vmatmul.mubr.msk.bf16.gmra.mrb[100].mxu0 %vm396_vm2, %v3909_v26  ;;  %v1014_v26 = vrot.slane %v3609_v18, 3 }
  0xe3   : > { %3180 = vmatmul.mubr.msk.bf16.gmra.mrb[100].mxu1 %vm396_vm2, %v705_v13  ;;  %3241 = vmatprep.mubr.msk.bf16.mxu0 %vm3521_vm1, %v5481_v0  ;;  %v979_v13 = vpack.c.bf16 %v297_v28, %v3818_v25 }
  0xe4   : > { %3183 = vmatprep.mubr.msk.bf16.mxu1 %vm3521_vm1, %v5481_v0  ;;  %v1015_v43 = vsel %vm986_vm4, %v1012_v31, %v1014_v26  ;;  %v1017_v16 = vsel %vm986_vm4, %v1014_v26, %v1016_v63 }
  0xe5   : > { %v1024_v14 = vrot.slane %v979_v13, 3 }
  0xe7   : > { %v1025_v25 = vsel %vm986_vm4, %v1022_v36, %v1024_v14 }
  0xea   : > { %3242 = vmatmul.mubr.msk.bf16.gmra.mrb[104].mxu0 %vm396_vm2, %v1013_v7  ;;  %v298_v7 = vld [vmem:[%s3585_s28 + $0x170] sm:$0xff] }
  0xeb   : > { %3184 = vmatmul.mubr.msk.bf16.gmra.mrb[104].mxu1 %vm396_vm2, %v707_v57  ;;  %3245 = vmatprep.mubr.msk.bf16.mxu0 %vm3521_vm1, %v5481_v0  ;;  %v299_v57 = vld [vmem:[%s3585_s28 + $0x178] sm:$0xff] }
  0xec   : > { %3187 = vmatprep.mubr.msk.bf16.mxu1 %vm3521_vm1, %v5481_v0 }
  0xed   : > { %v4190_v15 = vpop.f32.mrb[0].mxu0 }
  0xee   : > { %v3023_v22 = vpop.f32.mrb[1].mxu0  ;;  %v4193_v47 = vpop.f32.mrb[0].mxu1 }
  0xef   : > { %v4201_v18 = vpop.f32.mrb[2].mxu0  ;;  %v3079_v54 = vpop.f32.mrb[1].mxu1 }
  0xf0   : > { %v3024_v30 = vpop.f32.mrb[3].mxu0  ;;  %v4206_v56 = vpop.f32.mrb[2].mxu1  ;;  %v980_v54 = vpack.c.bf16 %v299_v57, %v298_v7 }
  0xf1   : > { %v3080_v11 = vpop.f32.mrb[3].mxu1 }
  0xf2   : > { %3246 = vmatmul.mubr.msk.bf16.gmra.mrb[108].mxu0 %vm396_vm2, %v1015_v43 }
  0xf3   : > { %3188 = vmatmul.mubr.msk.bf16.gmra.mrb[108].mxu1 %vm396_vm2, %v706_v33  ;;  %3249 = vmatprep.mubr.msk.bf16.mxu0 %vm3521_vm1, %v5481_v0 }
  0xf4   : > { %3309 = vmatprep.mubr.msk.f32.mxu1 %vm3521_vm1, %v5481_v0 }
  0xf5   : > { %v4217_v34 = vpop.f32.mrb[4].mxu0 }
  0xf6   : > { %v3027_v4 = vpop.f32.mrb[5].mxu0  ;;  %v4219_v10 = vpop.f32.mrb[4].mxu1 }
  0xf7   : > { %v4221_v35 = vpop.f32.mrb[6].mxu0  ;;  %v3083_v24 = vpop.f32.mrb[5].mxu1  ;;  %v1026_v4 = vrot.slane %v980_v54, 3 }
  0xf8   : > { %v3028_v44 = vpop.f32.mrb[7].mxu0  ;;  %v4224_v39 = vpop.f32.mrb[6].mxu1  ;;  %v1432_v24 = vld [vmem:[%s5476_s4 + $0x28] sm:$0xff] }
  0xf9   : > { %v3084_v8 = vpop.f32.mrb[7].mxu1 }
  0xfa   : > { %3250 = vmatmul.mubr.msk.bf16.gmra.mrb[112].mxu0 %vm396_vm2, %v1017_v16  ;;  %v1431_v16 = vld [vmem:[%s5476_s4 + $0x20] sm:$0xff] }
  0xfb   : > { %3253 = vmatprep.mubr.msk.bf16.mxu0 %vm3521_vm1, %v5481_v0  ;;  %v4302_v8 = vpack.c.bf16 %v1432_v24, %v1431_v16 }
  0xfd   : > { %v4230_v45 = vpop.f32.mrb[8].mxu0  ;;  %3365 = vmatpush3.bf16.msra.mxu1 %v4302_v8 }
  0xfe   : > { %v3031_v20 = vpop.f32.mrb[9].mxu0  ;;  %v4232_v40 = vpop.f32.mrb[8].mxu1  ;;  %3366 = vmatprep.subr.bf16.mxu1 %v5479_v52 }
  0xff   : > { %v4234_v29 = vpop.f32.mrb[10].mxu0  ;;  %v3087_v61 = vpop.f32.mrb[9].mxu1 }
 0x100   : > { %v3032_v50 = vpop.f32.mrb[11].mxu0  ;;  %v4237_v21 = vpop.f32.mrb[10].mxu1 }
 0x101   : > { %v3088_v60 = vpop.f32.mrb[11].mxu1  ;;  %v1027_v50 = vsel %vm986_vm4, %v1024_v14, %v1026_v4 }
 0x102   : > { %3254 = vmatmul.mubr.msk.bf16.gmra.mrb[116].mxu0 %vm396_vm2, %v1019_v51 }
 0x103   : > { %3257 = vmatprep.mubr.msk.bf16.mxu0 %vm3521_vm1, %v5481_v0 }
 0x105   : > { %v4243_v12 = vpop.f32.mrb[12].mxu0 }
 0x106   : > { %v3035_v53 = vpop.f32.mrb[13].mxu0  ;;  %v4245_v58 = vpop.f32.mrb[12].mxu1 }
 0x107   : > { %v4253_v62 = vpop.f32.mrb[14].mxu0  ;;  %v3091_v2 = vpop.f32.mrb[13].mxu1 }
 0x108   : > { %v3036_v3 = vpop.f32.mrb[15].mxu0  ;;  %v4258_v6 = vpop.f32.mrb[14].mxu1 }
 0x109   : > { %v3092_v9 = vpop.f32.mrb[15].mxu1 }
 0x10a   : > { %3258 = vmatmul.mubr.msk.bf16.gmra.mrb[120].mxu0 %vm396_vm2, %v1021_v5 }
 0x10b   : > { %3261 = vmatprep.mubr.msk.bf16.mxu0 %vm3521_vm1, %v5481_v0 }
 0x10d   : > { %v4267_v37 = vpop.f32.mrb[16].mxu0 }
 0x10e   : > { %v3039_v19 = vpop.f32.mrb[17].mxu0  ;;  %v4269_v49 = vpop.f32.mrb[16].mxu1 }
 0x10f   : > { %v4271_v59 = vpop.f32.mrb[18].mxu0  ;;  %v3095_v46 = vpop.f32.mrb[17].mxu1 }
 0x110   : > { %v3040_v42 = vpop.f32.mrb[19].mxu0  ;;  %v4275_v31 = vpop.f32.mrb[18].mxu1 }
 0x111   : > { %v3096_v33 = vpop.f32.mrb[19].mxu1 }
 0x112   : > { %3262 = vmatmul.mubr.msk.bf16.gmra.mrb[124].mxu0 %vm396_vm2, %v1023_v41  ;;  %v1434_v33 = vld [vmem:[%s5476_s4 + $0x38] sm:$0xff] }
 0x113   : > { %3265 = vmatprep.mubr.msk.bf16.mxu0 %vm3521_vm1, %v5481_v0 }
 0x115   : > { %v4282_v26 = vpop.f32.mrb[20].mxu0 }
 0x116   : > { %v3043_v22 = vpop.f32.mrb[21].mxu0  ;;  %v4284_v17 = vpop.f32.mrb[20].mxu1 }
 0x117   : > { %v4286_v23 = vpop.f32.mrb[22].mxu0  ;;  %v3099_v43 = vpop.f32.mrb[21].mxu1 }
 0x118   : > { %v3044_v30 = vpop.f32.mrb[23].mxu0  ;;  %v4289_v11 = vpop.f32.mrb[22].mxu1 }
 0x119   : > { %v3100_v63 = vpop.f32.mrb[23].mxu1 }
 0x11a   : > { %3266 = vmatmul.mubr.msk.bf16.gmra.mrb[128].mxu0 %vm396_vm2, %v1025_v25 }
 0x11b   : > { %3269 = vmatprep.mubr.msk.bf16.mxu0 %vm3521_vm1, %v5481_v0 }
 0x11d   : > { %v4300_v44 = vpop.f32.mrb[24].mxu0 }
 0x11e   : > { %v3047_v27 = vpop.f32.mrb[25].mxu0  ;;  %v4304_v20 = vpop.f32.mrb[24].mxu1 }
 0x11f   : > { %v4306_v51 = vpop.f32.mrb[26].mxu0  ;;  %v3103_v61 = vpop.f32.mrb[25].mxu1 }
 0x120   : > { %v3048_v60 = vpop.f32.mrb[27].mxu0  ;;  %v661_v38 = vpop.f32.mrb[26].mxu1 }
 0x121   : > { %v3104_v53 = vpop.f32.mrb[27].mxu1 }
 0x122   : > { %3270 = vmatmul.mubr.msk.bf16.gmra.mrb[132].mxu0 %vm396_vm2, %v1027_v50 }
 0x123   : > { %3273 = vmatprep.mubr.msk.bf16.mxu0 %vm3521_vm1, %v5481_v0 }
 0x125   : > { %v4314_v1 = vpop.f32.mrb[28].mxu0 }
 0x126   : > { %v813_v32 = vpop.f32.mrb[28].mxu1  ;;  %v3051_v5 = vpop.f32.mrb[29].mxu0 }
 0x127   : > { %v4317_v2 = vadd.f32 %v813_v32, %v4190_v15  ;;  %v3109_v3 = vpop.f32.mrb[29].mxu1  ;;  %v4319_v9 = vpop.f32.mrb[30].mxu0  ;;  %v1433_v15 = vld [vmem:[%s5476_s4 + $0x30] sm:$0xff] }
 0x128   : > { %v816_v36 = vpop.f32.mrb[30].mxu1  ;;  %v3052_v28 = vpop.f32.mrb[31].mxu0  ;;  %v4338_v57 = vpack.c.bf16 %v1434_v33, %v1433_v15  ;;  %v1435_v15 = vld [vmem:[%s5476_s4 + $0x40] sm:$0xff] }
 0x129   : > { %v4322_v19 = vadd.f32 %v816_v36, %v4201_v18  ;;  %v3110_v41 = vpop.f32.mrb[31].mxu1 }
 0x12a   : > { %3274 = vmatmul.mubr.msk.bf16.gmra.mrb[136].mxu0 %vm396_vm2, %v1026_v4  ;;  %5532 = vst [vmem:[#allocation2_spill] sm:$0xff] %v4338_v57  ;;  %3368 = vmatpush3.bf16.msra.mxu1 %v4338_v57 }
 0x12b   : > { %3369 = vmatprep.subr.bf16.mxu1 %v5479_v52 }
 0x12d   : > { %v4325_v46 = vpop.f32.mrb[32].mxu0 }
 0x12e   : > { %v821_v13 = vpop.f32.mrb[32].mxu1  ;;  %v3055_v42 = vpop.f32.mrb[33].mxu0 }
 0x12f   : > { %v4334_v14 = vadd.f32 %v821_v13, %v4217_v34  ;;  %v3113_v18 = vpop.f32.mrb[33].mxu1  ;;  %v4336_v7 = vpop.f32.mrb[34].mxu0 }
 0x130   : > { %v824_v22 = vpop.f32.mrb[34].mxu1  ;;  %v3056_v25 = vpop.f32.mrb[35].mxu0 }
 0x131   : > { %v4341_v43 = vadd.f32 %v824_v22, %v4221_v35  ;;  %v3114_v54 = vpop.f32.mrb[35].mxu1 }
 0x135   : > { %v4345_v30 = vpop.f32.mrb[36].mxu0 }
 0x136   : > { %v829_v63 = vpop.f32.mrb[36].mxu1  ;;  %v3059_v34 = vpop.f32.mrb[37].mxu0 }
 0x137   : > { %v4348_v4 = vadd.f32 %v829_v63, %v4230_v45  ;;  %v3117_v16 = vpop.f32.mrb[37].mxu1  ;;  %v4350_v24 = vpop.f32.mrb[38].mxu0 }
 0x138   : > { %v832_v27 = vpop.f32.mrb[38].mxu1  ;;  %v3060_v61 = vpop.f32.mrb[39].mxu0 }
 0x139   : > { %v4353_v35 = vadd.f32 %v832_v27, %v4234_v29  ;;  %v3118_v50 = vpop.f32.mrb[39].mxu1 }
 0x13d   : > { %v4355_v60 = vpop.f32.mrb[40].mxu0 }
 0x13e   : > { %v837_v38 = vpop.f32.mrb[40].mxu1  ;;  %v3063_v53 = vpop.f32.mrb[41].mxu0 }
 0x13f   : > { %v4358_v32 = vadd.f32 %v837_v38, %v4243_v12  ;;  %v3121_v5 = vpop.f32.mrb[41].mxu1  ;;  %v4360_v3 = vpop.f32.mrb[42].mxu0  ;;  %v1436_v12 = vld [vmem:[%s5476_s4 + $0x48] sm:$0xff] }
 0x140   : > { %v840_v45 = vpop.f32.mrb[42].mxu1  ;;  %v3064_v36 = vpop.f32.mrb[43].mxu0 }
 0x141   : > { %v4363_v28 = vadd.f32 %v840_v45, %v4253_v62  ;;  %v3122_v41 = vpop.f32.mrb[43].mxu1  ;;  %v4378_v62 = vpack.c.bf16 %v1436_v12, %v1435_v15 }
 0x143   : > { %5533 = vst [vmem:[#allocation3_spill] sm:$0xff] %v4378_v62  ;;  %3371 = vmatpush3.bf16.msra.mxu1 %v4378_v62 }
 0x144   : > { %3372 = vmatprep.subr.bf16.mxu1 %v5479_v52 }
 0x145   : > { %v4365_v13 = vpop.f32.mrb[44].mxu0 }
 0x146   : > { %v845_v29 = vpop.f32.mrb[44].mxu1  ;;  %v3067_v42 = vpop.f32.mrb[45].mxu0 }
 0x147   : > { %v4374_v33 = vadd.f32 %v845_v29, %v4267_v37  ;;  %v3125_v18 = vpop.f32.mrb[45].mxu1  ;;  %v4376_v22 = vpop.f32.mrb[46].mxu0  ;;  %v1437_v42 = vld [vmem:[%s5476_s4 + $0x50] sm:$0xff] }
 0x148   : > { %v848_v25 = vpop.f32.mrb[46].mxu1  ;;  %v3068_v54 = vpop.f32.mrb[47].mxu0 }
 0x149   : > { %v4381_v63 = vadd.f32 %v848_v25, %v4271_v59  ;;  %v3126_v34 = vpop.f32.mrb[47].mxu1 }
 0x14d   : > { %v4385_v16 = vpop.f32.mrb[48].mxu0 }
 0x14e   : > { %v853_v27 = vpop.f32.mrb[48].mxu1  ;;  %v3071_v37 = vpop.f32.mrb[49].mxu0 }
 0x14f   : > { %v4388_v61 = vadd.f32 %v853_v27, %v4282_v26  ;;  %v3129_v50 = vpop.f32.mrb[49].mxu1  ;;  %v4390_v38 = vpop.f32.mrb[50].mxu0  ;;  %v1438_v26 = vld [vmem:[%s5476_s4 + $0x58] sm:$0xff] }
 0x150   : > { %v856_v53 = vpop.f32.mrb[50].mxu1  ;;  %v3072_v5 = vpop.f32.mrb[51].mxu0 }
 0x151   : > { %v4393_v59 = vadd.f32 %v856_v53, %v4286_v23  ;;  %v3130_v45 = vpop.f32.mrb[51].mxu1  ;;  %v4408_v23 = vpack.c.bf16 %v1438_v26, %v1437_v42 }
 0x153   : > { %5534 = vst [vmem:[#allocation4_spill] sm:$0xff] %v4408_v23  ;;  %3374 = vmatpush3.bf16.msra.mxu1 %v4408_v23 }
 0x154   : > { %3375 = vmatprep.subr.bf16.mxu1 %v5479_v52 }
 0x155   : > { %v4395_v36 = vpop.f32.mrb[52].mxu0 }
 0x156   : > { %v861_v41 = vpop.f32.mrb[52].mxu1  ;;  %v3075_v29 = vpop.f32.mrb[53].mxu0 }
 0x157   : > { %v4404_v15 = vadd.f32 %v861_v41, %v4300_v44  ;;  %v3133_v12 = vpop.f32.mrb[53].mxu1  ;;  %v4406_v18 = vpop.f32.mrb[54].mxu0 }
 0x158   : > { %v864_v25 = vpop.f32.mrb[54].mxu1  ;;  %v3076_v54 = vpop.f32.mrb[55].mxu0 }
 0x159   : > { %v4411_v34 = vadd.f32 %v864_v25, %v4306_v51  ;;  %v3134_v27 = vpop.f32.mrb[55].mxu1 }
 0x15d   : > { %v1133_v37 = vpop.f32.mrb[56].mxu0 }
 0x15e   : > { %v869_v50 = vpop.f32.mrb[56].mxu1  ;;  %v4416_v44 = vadd.f32 %v1133_v37, %v4317_v2  ;;  %v3195_v53 = vpop.f32.mrb[57].mxu0 }
 0x15f   : > { %v4419_v5 = vadd.f32 %v869_v50, %v4314_v1  ;;  %v3137_v45 = vpop.f32.mrb[57].mxu1  ;;  %v1136_v41 = vpop.f32.mrb[58].mxu0 }
 0x160   : > { %v872_v29 = vpop.f32.mrb[58].mxu1  ;;  %v4422_v51 = vadd.f32 %v1136_v41, %v4322_v19  ;;  %v3196_v42 = vpop.f32.mrb[59].mxu0 }
 0x161   : > { %v4425_v26 = vadd.f32 %v872_v29, %v4319_v9  ;;  %v3138_v12 = vpop.f32.mrb[59].mxu1 }
 0x165   : > { %v1141_v25 = vpop.f32.mrb[60].mxu0 }
 0x166   : > { %v877_v54 = vpop.f32.mrb[60].mxu1  ;;  %v4428_v2 = vadd.f32 %v1141_v25, %v4334_v14  ;;  %v3199_v27 = vpop.f32.mrb[61].mxu0 }
 0x167   : > { %v4431_v1 = vadd.f32 %v877_v54, %v4325_v46  ;;  %v3141_v37 = vpop.f32.mrb[61].mxu1  ;;  %v1144_v50 = vpop.f32.mrb[62].mxu0  ;;  %v1439_v46 = vld [vmem:[%s5476_s4 + $0x60] sm:$0xff] }
 0x168   : > { %v880_v53 = vpop.f32.mrb[62].mxu1  ;;  %v4434_v19 = vadd.f32 %v1144_v50, %v4341_v43  ;;  %v3200_v45 = vpop.f32.mrb[63].mxu0  ;;  %v1440_v43 = vld [vmem:[%s5476_s4 + $0x68] sm:$0xff] }
 0x169   : > { %v4437_v9 = vadd.f32 %v880_v53, %v4336_v7  ;;  %v3142_v41 = vpop.f32.mrb[63].mxu1  ;;  %v4451_v27 = vpack.c.bf16 %v1440_v43, %v1439_v46 }
 0x16a   : > { %v4461_v41 = vpop.permute.xlu0 %1446 }
 0x16b   : > { %5535 = vst [vmem:[#allocation5_spill] sm:$0xff] %v4451_v27  ;;  %3377 = vmatpush3.bf16.msra.mxu1 %v4451_v27  ;;  %5536 = vst [vmem:[#allocation6_spill] sm:$0xff] %v4461_v41 }
 0x16c   : > { %3378 = vmatprep.subr.bf16.mxu1 %v5479_v52 }
 0x16d   : > { %v1149_v29 = vpop.f32.mrb[64].mxu0 }
 0x16e   : > { %v885_v42 = vpop.f32.mrb[64].mxu1  ;;  %v4440_v14 = vadd.f32 %v1149_v29, %v4348_v4  ;;  %v3203_v12 = vpop.f32.mrb[65].mxu0 }
 0x16f   : > { %v4449_v25 = vadd.f32 %v885_v42, %v4345_v30  ;;  %v3145_v7 = vpop.f32.mrb[65].mxu1  ;;  %v1152_v54 = vpop.f32.mrb[66].mxu0 }
 0x170   : > { %v888_v37 = vpop.f32.mrb[66].mxu1  ;;  %v4454_v4 = vadd.f32 %v1152_v54, %v4353_v35  ;;  %v3204_v50 = vpop.f32.mrb[67].mxu0 }
 0x171   : > { %v4457_v53 = vadd.f32 %v888_v37, %v4350_v24  ;;  %v3146_v45 = vpop.f32.mrb[67].mxu1  ;;  %v4463_v30 = vpop.permute.xlu1 %1456 }
 0x172   : > { %5537 = vst [vmem:[#allocation7_spill] sm:$0xff] %v4463_v30  ;;  %v4477_v52 = vpop.permute.xlu0 %1451 }
 0x173   : > { %5538 = vst [vmem:[#allocation8_spill] sm:$0xff] %v4477_v52 }
 0x175   : > { %v1157_v29 = vpop.f32.mrb[68].mxu0  ;;  %v4479_v0 = vpop.permute.xlu1 %1461 }
 0x176   : > { %v893_v42 = vpop.f32.mrb[68].mxu1  ;;  %v4466_v12 = vadd.f32 %v1157_v29, %v4358_v32  ;;  %v3207_v35 = vpop.f32.mrb[69].mxu0  ;;  %5539 = vst [vmem:[#allocation9_spill] sm:$0xff] %v4479_v0 }
 0x177   : > { %v4469_v46 = vadd.f32 %v893_v42, %v4355_v60  ;;  %v3149_v24 = vpop.f32.mrb[69].mxu1  ;;  %v1160_v43 = vpop.f32.mrb[70].mxu0 }
 0x178   : > { %v896_v7 = vpop.f32.mrb[70].mxu1  ;;  %v4472_v54 = vadd.f32 %v1160_v43, %v4363_v28  ;;  %v3208_v37 = vpop.f32.mrb[71].mxu0 }
 0x179   : > { %v4475_v50 = vadd.f32 %v896_v7, %v4360_v3  ;;  %v3150_v45 = vpop.f32.mrb[71].mxu1  ;;  %v4493_v27 = vpop.permute.xlu0 %1466 }
 0x17a   : > { %5540 = vst [vmem:[#allocation10_spill] sm:$0xff] %v4493_v27  ;;  %v4495_v23 = vpop.permute.xlu1 %1471 }
 0x17b   : > { %5541 = vst [vmem:[#allocation11_spill] sm:$0xff] %v4495_v23 }
 0x17d   : > { %v1165_v32 = vpop.f32.mrb[72].mxu0 }
 0x17e   : > { %v901_v29 = vpop.f32.mrb[72].mxu1  ;;  %v4482_v60 = vadd.f32 %v1165_v32, %v4374_v33  ;;  %v3211_v42 = vpop.f32.mrb[73].mxu0 }
 0x17f   : > { %v4485_v35 = vadd.f32 %v901_v29, %v4365_v13  ;;  %v3153_v28 = vpop.f32.mrb[73].mxu1  ;;  %v1168_v24 = vpop.f32.mrb[74].mxu0 }
 0x180   : > { %v904_v43 = vpop.f32.mrb[74].mxu1  ;;  %v4488_v3 = vadd.f32 %v1168_v24, %v4381_v63  ;;  %v3212_v7 = vpop.f32.mrb[75].mxu0  ;;  %v4503_v63 = vld [vmem:[%s5474_s2] ss:$0 sm:$0xff] }
 0x181   : > { %v4491_v37 = vadd.f32 %v904_v43, %v4376_v22  ;;  %v3154_v45 = vpop.f32.mrb[75].mxu1 }
 0x185   : > { %v1173_v33 = vpop.f32.mrb[76].mxu0 }
 0x186   : > { %v909_v32 = vpop.f32.mrb[76].mxu1  ;;  %v4498_v13 = vadd.f32 %v1173_v33, %v4388_v61  ;;  %v3215_v29 = vpop.f32.mrb[77].mxu0  ;;  %v4513_v61 = vadd.f32 %v4503_v63, %v4422_v51 }
 0x187   : > { %v4506_v42 = vadd.f32 %v909_v32, %v4385_v16  ;;  %v3157_v22 = vpop.f32.mrb[77].mxu1  ;;  %v1176_v28 = vpop.f32.mrb[78].mxu0  ;;  %v4520_v29 = vadd.f32 %v4503_v63, %v4416_v44  ;;  %v4524_v16 = vadd.f32 %v4503_v63, %v4428_v2  ;;  %v1441_v2 = vld [vmem:[%s5476_s4 + $0x70] sm:$0xff] }
 0x188   : > { %v912_v24 = vpop.f32.mrb[78].mxu1  ;;  %v4509_v43 = vadd.f32 %v1176_v28, %v4393_v59  ;;  %v3216_v7 = vpop.f32.mrb[79].mxu0  ;;  %5542 = vst [vmem:[#allocation12_spill] sm:$0xff] %v4513_v61  ;;  %v1650_v59 = vmul.f32 %v4477_v52, %v4513_v61  ;;  %v4547_v52 = vadd.f32 %v4503_v63, %v4434_v19 }
 0x189   : > { %v4516_v45 = vadd.f32 %v912_v24, %v4390_v38  ;;  %v3158_v33 = vpop.f32.mrb[79].mxu1  ;;  %5543 = vst [vmem:[#allocation13_spill] sm:$0xff] %v4520_v29  ;;  %5544 = vst [vmem:[#allocation14_spill] sm:$0xff] %v4524_v16  ;;  %v4526_v32 = vpop.permute.xlu0 %1476  ;;  %v1649_v38 = vmul.f32 %v4461_v41, %v4520_v29  ;;  %v1442_v7 = vld [vmem:[%s5476_s4 + $0x78] sm:$0xff] }
 0x18a   : > { %5545 = vst [vmem:[#allocation15_spill] sm:$0xff] %v4526_v32  ;;  %v4530_v22 = vpop.permute.xlu1 %1481  ;;  %v1651_v33 = vmul.f32 %v4463_v30, %v4524_v16  ;;  %v4559_v30 = vadd.f32 %v4503_v63, %v4440_v14  ;;  %v4574_v14 = vadd.f32 %v4503_v63, %v4454_v4 }
 0x18b   : > { %v1690_v57 = vadd.f32 %v1650_v59, %v1649_v38 }
 0x18d   : > { %v1181_v51 = vpop.f32.mrb[80].mxu0 }
 0x18e   : > { %v917_v28 = vpop.f32.mrb[80].mxu1  ;;  %v4535_v24 = vadd.f32 %v1181_v51, %v4404_v15  ;;  %v3219_v44 = vpop.f32.mrb[81].mxu0 }
 0x18f   : > { %v4550_v41 = vadd.f32 %v917_v28, %v4395_v36  ;;  %v3161_v15 = vpop.f32.mrb[81].mxu1  ;;  %v1184_v51 = vpop.f32.mrb[82].mxu0  ;;  %v4552_v44 = vpack.c.bf16 %v1442_v7, %v1441_v2  ;;  %v5546_v36 = vmov 0.0   ;;  %v1691_v28 = vadd.f32 %v1690_v57, %v1651_v33 }
 0x190   : > { %v920_v61 = vpop.f32.mrb[82].mxu1  ;;  %v4555_v29 = vadd.f32 %v1184_v51, %v4411_v34  ;;  %v3220_v62 = vpop.f32.mrb[83].mxu0  ;;  %v1652_v2 = vmul.f32 %v4479_v0, %v4547_v52  ;;  %v4583_v7 = vadd.f32 %v4503_v63, %v4466_v12 }
 0x191   : > { %v4562_v19 = vadd.f32 %v920_v61, %v4406_v18  ;;  %v3162_v16 = vpop.f32.mrb[83].mxu1  ;;  %3380 = vmatpush3.bf16.msra.mxu1 %v4552_v44  ;;  %v4568_v34 = vpop.permute.xlu0 %1486  ;;  %v1653_v62 = vmul.f32 %v4493_v27, %v4559_v30 }
 0x192   : > { %3312 = vmatprep.subr.mxu1 %v5546_v36  ;;  %5547 = vst [vmem:[#allocation16_spill] sm:$0xff] %v4568_v34  ;;  %v4576_v18 = vpop.permute.xlu1 %1491  ;;  %v1692_v38 = vadd.f32 %v1691_v28, %v1652_v2  ;;  %v1655_v12 = vmul.f32 %v4526_v32, %v4583_v7 }
 0x193   : > { %5548 = vst [vmem:[#allocation17_spill] sm:$0xff] %v4576_v18 }
 0x195   : > { %v1189_v61 = vpop.f32.mrb[84].mxu0 }
 0x196   : > { %v925_v16 = vpop.f32.mrb[84].mxu1  ;;  %v4579_v59 = vadd.f32 %v1189_v61, %v4419_v5  ;;  %v3223_v57 = vpop.f32.mrb[85].mxu0  ;;  %v1654_v5 = vmul.f32 %v4495_v23, %v4574_v14  ;;  %v1693_v61 = vadd.f32 %v1692_v38, %v1653_v62 }
 0x197   : > { %v4586_v33 = vadd.f32 %v925_v16, %v4193_v47  ;;  %v3165_v15 = vpop.f32.mrb[85].mxu1  ;;  %v1192_v51 = vpop.f32.mrb[86].mxu0  ;;  %v4600_v47 = vadd.f32 %v4503_v63, %v4472_v54 }
 0x198   : > { %v928_v4 = vpop.f32.mrb[86].mxu1  ;;  %v4589_v27 = vadd.f32 %v1192_v51, %v4425_v26  ;;  %v3224_v0 = vpop.f32.mrb[87].mxu0  ;;  %v1694_v26 = vadd.f32 %v1693_v61, %v1654_v5 }
 0x199   : > { %v4594_v28 = vadd.f32 %v928_v4, %v4206_v56  ;;  %v3166_v2 = vpop.f32.mrb[87].mxu1  ;;  %v4602_v16 = vpop.permute.xlu0 %1496  ;;  %v4608_v0 = vadd.f32 %v4503_v63, %v4482_v60  ;;  %v1656_v54 = vmul.f32 %v4530_v22, %v4600_v47 }
 0x19a   : > { %5549 = vst [vmem:[#allocation18_spill] sm:$0xff] %v4602_v16  ;;  %v4604_v57 = vpop.permute.xlu1 %1501  ;;  %v1695_v51 = vadd.f32 %v1694_v26, %v1655_v12 }
 0x19b   : > { %5550 = vst [vmem:[#allocation19_spill] sm:$0xff] %v4604_v57  ;;  %v1657_v23 = vmul.f32 %v4568_v34, %v4608_v0 }
 0x19d   : > { %v1197_v62 = vpop.f32.mrb[88].mxu0 }
 0x19e   : > { %v933_v56 = vpop.f32.mrb[88].mxu1  ;;  %v4611_v38 = vadd.f32 %v1197_v62, %v4431_v1  ;;  %v3227_v15 = vpop.f32.mrb[89].mxu0  ;;  %v4625_v1 = vadd.f32 %v4503_v63, %v4488_v3  ;;  %v4632_v62 = vadd.f32 %v4503_v63, %v4498_v13  ;;  %v4645_v13 = vadd.f32 %v4503_v63, %v4509_v43 }
 0x19f   : > { %v4616_v4 = vadd.f32 %v933_v56, %v4219_v10  ;;  %v3169_v5 = vpop.f32.mrb[89].mxu1  ;;  %v1200_v61 = vpop.f32.mrb[90].mxu0  ;;  %v1696_v10 = vadd.f32 %v1695_v51, %v1656_v54 }
 0x1a0   : > { %v936_v2 = vpop.f32.mrb[90].mxu1  ;;  %v4619_v32 = vadd.f32 %v1200_v61, %v4437_v9  ;;  %v3228_v60 = vpop.f32.mrb[91].mxu0  ;;  %v1658_v15 = vmul.f32 %v4576_v18, %v4625_v1  ;;  %v1659_v51 = vmul.f32 %v4602_v16, %v4632_v62 }
 0x1a1   : > { %v4628_v12 = vadd.f32 %v936_v2, %v4224_v39  ;;  %v3170_v26 = vpop.f32.mrb[91].mxu1  ;;  %v4634_v56 = vpop.permute.xlu0 %1506  ;;  %v1697_v9 = vadd.f32 %v1696_v10, %v1657_v23 }
 0x1a2   : > { %5551 = vst [vmem:[#allocation20_spill] sm:$0xff] %v4634_v56  ;;  %v4638_v5 = vpop.permute.xlu1 %1511 }
 0x1a3   : > { %v1698_v34 = vadd.f32 %v1697_v9, %v1658_v15 }
 0x1a5   : > { %v1205_v61 = vpop.f32.mrb[92].mxu0  ;;  %v1699_v43 = vadd.f32 %v1698_v34, %v1659_v51  ;;  %v4673_v51 = vadd.f32 %v4503_v63, %v4579_v59 }
 0x1a6   : > { %v941_v3 = vpop.f32.mrb[92].mxu1  ;;  %v1317_v60 = vadd.f32 %v1205_v61, %v4449_v25  ;;  %v3231_v39 = vpop.f32.mrb[93].mxu0  ;;  %v4653_v25 = vadd.f32 %v4503_v63, %v4535_v24 }
 0x1a7   : > { %v4648_v54 = vadd.f32 %v941_v3, %v4232_v40  ;;  %v3173_v23 = vpop.f32.mrb[93].mxu1  ;;  %v1208_v2 = vpop.f32.mrb[94].mxu0  ;;  %v1660_v40 = vmul.f32 %v4604_v57, %v4645_v13 }
 0x1a8   : > { %v944_v26 = vpop.f32.mrb[94].mxu1  ;;  %v1318_v10 = vadd.f32 %v1208_v2, %v4457_v53  ;;  %v3232_v18 = vpop.f32.mrb[95].mxu0  ;;  %5552 = vst [vmem:[#allocation21_spill] sm:$0xff] %v4653_v25  ;;  %v1661_v53 = vmul.f32 %v4634_v56, %v4653_v25 }
 0x1a9   : > { %v4656_v61 = vadd.f32 %v944_v26, %v4237_v21  ;;  %v3174_v39 = vpop.f32.mrb[95].mxu1  ;;  %v4660_v3 = vpop.permute.xlu0 %1516  ;;  %v4668_v18 = vadd.f32 %v4503_v63, %v4555_v29  ;;  %v1700_v34 = vadd.f32 %v1699_v43, %v1660_v40 }
 0x1aa   : > { %v4662_v23 = vpop.permute.xlu1 %1521  ;;  %v1663_v59 = vmul.f32 %v4660_v3, %v4673_v51 }
 0x1ab   : > { %5553 = vst [vmem:[#allocation22_spill] sm:$0xff] %v4662_v23  ;;  %v1701_v16 = vadd.f32 %v1700_v34, %v1661_v53  ;;  %v1662_v25 = vmul.f32 %v4638_v5, %v4668_v18  ;;  %v4696_v53 = vadd.f32 %v4503_v63, %v4611_v38 }
 0x1ad   : > { %v1213_v24 = vpop.f32.mrb[96].mxu0  ;;  %v4690_v40 = vpop.permute.xlu0 %1526 }
 0x1ae   : > { %v949_v9 = vpop.f32.mrb[96].mxu1  ;;  %v1319_v21 = vadd.f32 %v1213_v24, %v4469_v46  ;;  %v3235_v15 = vpop.f32.mrb[97].mxu0  ;;  %5554 = vst [vmem:[#allocation23_spill] sm:$0xff] %v4690_v40  ;;  %v1665_v38 = vmul.f32 %v4690_v40, %v4696_v53 }
 0x1af   : > { %v4676_v2 = vadd.f32 %v949_v9, %v4245_v58  ;;  %v3177_v26 = vpop.f32.mrb[97].mxu1  ;;  %v1216_v39 = vpop.f32.mrb[98].mxu0  ;;  %v4688_v58 = vadd.f32 %v4503_v63, %v4589_v27 }
 0x1b0   : > { %v952_v56 = vpop.f32.mrb[98].mxu1  ;;  %v1320_v57 = vadd.f32 %v1216_v39, %v4475_v50  ;;  %v3236_v29 = vpop.f32.mrb[99].mxu0  ;;  %v1702_v50 = vadd.f32 %v1701_v16, %v1662_v25 }
 0x1b1   : > { %v4682_v46 = vadd.f32 %v952_v56, %v4258_v6  ;;  %v3178_v43 = vpop.f32.mrb[99].mxu1  ;;  %v4692_v24 = vpop.permute.xlu1 %1531  ;;  %v1664_v26 = vmul.f32 %v4662_v23, %v4688_v58  ;;  %v4734_v23 = vadd.f32 %v4503_v63, %v1319_v21 }
 0x1b2   : > { %5555 = vst [vmem:[#allocation24_spill] sm:$0xff] %v4692_v24  ;;  %v1703_v34 = vadd.f32 %v1702_v50, %v1663_v59 }
 0x1b3   : > { %5558 = vst [vmem:[#allocation27_spill] sm:$0xff] %v4734_v23 }
 0x1b5   : > { %v1221_v9 = vpop.f32.mrb[100].mxu0 }
 0x1b6   : > { %v957_v6 = vpop.f32.mrb[100].mxu1  ;;  %v1321_v56 = vadd.f32 %v1221_v9, %v4485_v35  ;;  %v3239_v15 = vpop.f32.mrb[101].mxu0  ;;  %v4709_v35 = vadd.f32 %v4503_v63, %v4619_v32  ;;  %v1704_v9 = vadd.f32 %v1703_v34, %v1664_v26  ;;  %v4727_v34 = vadd.f32 %v4503_v63, %v1318_v10 }
 0x1b7   : > { %v4702_v27 = vadd.f32 %v957_v6, %v4269_v49  ;;  %v3181_v39 = vpop.f32.mrb[101].mxu1  ;;  %v1224_v29 = vpop.f32.mrb[102].mxu0  ;;  %v4715_v49 = vadd.f32 %v4503_v63, %v1317_v60 }
 0x1b8   : > { %v960_v43 = vpop.f32.mrb[102].mxu1  ;;  %v1322_v16 = vadd.f32 %v1224_v29, %v4491_v37  ;;  %v3240_v25 = vpop.f32.mrb[103].mxu0  ;;  %v1705_v37 = vadd.f32 %v1704_v9, %v1665_v38  ;;  %v1666_v39 = vmul.f32 %v4692_v24, %v4709_v35 }
 0x1b9   : > { %v4712_v59 = vadd.f32 %v960_v43, %v4275_v31  ;;  %v3182_v50 = vpop.f32.mrb[103].mxu1  ;;  %v4717_v6 = vpop.permute.xlu0 %1536 }
 0x1ba   : > { %5556 = vst [vmem:[#allocation25_spill] sm:$0xff] %v4717_v6  ;;  %v4719_v15 = vpop.permute.xlu1 %1541  ;;  %v1667_v31 = vmul.f32 %v4717_v6, %v4715_v49  ;;  %v1706_v24 = vadd.f32 %v1705_v37, %v1666_v39  ;;  %v4748_v37 = vadd.f32 %v4503_v63, %v1320_v57 }
 0x1bb   : > { %5557 = vst [vmem:[#allocation26_spill] sm:$0xff] %v4719_v15  ;;  %v1668_v10 = vmul.f32 %v4719_v15, %v4727_v34 }
 0x1bd   : > { %v1229_v29 = vpop.f32.mrb[104].mxu0 }
 0x1be   : > { %v965_v25 = vpop.f32.mrb[104].mxu1  ;;  %v1323_v32 = vadd.f32 %v1229_v29, %v4506_v42  ;;  %v3243_v40 = vpop.f32.mrb[105].mxu0  ;;  %v1707_v29 = vadd.f32 %v1706_v24, %v1667_v31  ;;  %v4752_v24 = vadd.f32 %v4503_v63, %v1321_v56 }
 0x1bf   : > { %v4730_v60 = vadd.f32 %v965_v25, %v4284_v17  ;;  %v3185_v26 = vpop.f32.mrb[105].mxu1  ;;  %v1232_v43 = vpop.f32.mrb[106].mxu0 }
 0x1c0   : > { %v968_v38 = vpop.f32.mrb[106].mxu1  ;;  %v1324_v50 = vadd.f32 %v1232_v43, %v4516_v45  ;;  %v3244_v9 = vpop.f32.mrb[107].mxu0  ;;  %v1708_v43 = vadd.f32 %v1707_v29, %v1668_v10  ;;  %v4765_v29 = vadd.f32 %v4503_v63, %v1322_v16  ;;  %v4768_v10 = vadd.f32 %v4503_v63, %v1323_v32 }
 0x1c1   : > { %v4737_v42 = vadd.f32 %v968_v38, %v4289_v11  ;;  %v3186_v40 = vpop.f32.mrb[107].mxu1  ;;  %v4741_v17 = vpop.permute.xlu0 %1546 }
 0x1c2   : > { %5559 = vst [vmem:[#allocation28_spill] sm:$0xff] %v4741_v17  ;;  %v4743_v25 = vpop.permute.xlu1 %1551  ;;  %v1669_v45 = vmul.f32 %v4741_v17, %v4734_v23  ;;  %v4781_v32 = vadd.f32 %v4503_v63, %v1324_v50 }
 0x1c3   : > { %v1670_v6 = vmul.f32 %v4743_v25, %v4748_v37 }
 0x1c4   : > { %v1709_v57 = vadd.f32 %v1708_v43, %v1669_v45 }
 0x1c5   : > { %v1237_v21 = vpop.f32.mrb[108].mxu0 }
 0x1c6   : > { %v973_v39 = vpop.f32.mrb[108].mxu1  ;;  %v1325_v11 = vadd.f32 %v1237_v21, %v4550_v41  ;;  %v3247_v26 = vpop.f32.mrb[109].mxu0 }
 0x1c7   : > { %v4755_v31 = vadd.f32 %v973_v39, %v4304_v20  ;;  %v1240_v38 = vpop.f32.mrb[110].mxu0  ;;  %v3189_v9 = vpop.f32.mrb[109].mxu1  ;;  %v1710_v20 = vadd.f32 %v1709_v57, %v1670_v6 }
 0x1c8   : > { %v1326_v40 = vadd.f32 %v1240_v38, %v4562_v19  ;;  %v3248_v17 = vpop.f32.mrb[111].mxu0  ;;  %v976_v15 = vpop.f32.mrb[110].mxu1 }
 0x1c9   : > { %v3190_v23 = vpop.f32.mrb[111].mxu1  ;;  %v4760_v41 = vpop.permute.xlu0 %1556 }
 0x1ca   : > { %v1671_v56 = vmul.f32 %v4760_v41, %v4752_v24  ;;  %v4770_v17 = vpop.permute.xlu1 %1561 }
 0x1cb   : > { %v1672_v23 = vmul.f32 %v4770_v17, %v4765_v29 }
 0x1cc   : > { %v1711_v21 = vadd.f32 %v1710_v20, %v1671_v56 }
 0x1cd   : > { %v1245_v19 = vpop.f32.mrb[112].mxu0  ;;  %v4775_v26 = vpop.permute.xlu0 %1566 }
 0x1ce   : > { %v1327_v15 = vadd.f32 %v1245_v19, %v4586_v33  ;;  %v3251_v45 = vpop.f32.mrb[113].mxu0  ;;  %v1673_v6 = vmul.f32 %v4775_v26, %v4768_v10  ;;  %v1712_v38 = vadd.f32 %v1711_v21, %v1672_v23  ;;  %v4784_v33 = vadd.f32 %v4503_v63, %v1325_v11  ;;  %v4786_v9 = vpop.permute.xlu1 %1571 }
 0x1cf   : > { %v1248_v39 = vpop.f32.mrb[114].mxu0  ;;  %5560 = vst [vmem:[#allocation29_spill] sm:$0xff] %v4786_v9  ;;  %v1674_v56 = vmul.f32 %v4786_v9, %v4781_v32  ;;  %v4796_v21 = vadd.f32 %v4503_v63, %v1326_v40 }
 0x1d0   : > { %v1328_v16 = vadd.f32 %v1248_v39, %v4594_v28  ;;  %v3252_v43 = vpop.f32.mrb[115].mxu0  ;;  %v1713_v57 = vadd.f32 %v1712_v38, %v1673_v6  ;;  %v4800_v6 = vadd.f32 %v4503_v63, %v1327_v15 }
 0x1d1   : > { %v4790_v19 = vpop.permute.xlu0 %1576 }
 0x1d2   : > { %5561 = vst [vmem:[#allocation30_spill] sm:$0xff] %v4790_v19  ;;  %v1675_v50 = vmul.f32 %v4790_v19, %v4784_v33  ;;  %v1714_v43 = vadd.f32 %v1713_v57, %v1674_v56  ;;  %v4802_v38 = vpop.permute.xlu1 %1581 }
 0x1d3   : > { %5562 = vst [vmem:[#allocation31_spill] sm:$0xff] %v4802_v38 }
 0x1d4   : > { %v1715_v9 = vadd.f32 %v1714_v43, %v1675_v50 }
 0x1d5   : > { %v1253_v20 = vpop.f32.mrb[116].mxu0 }
 0x1d6   : > { %v1329_v28 = vadd.f32 %v1253_v20, %v4616_v4  ;;  %v3255_v45 = vpop.f32.mrb[117].mxu0  ;;  %v1676_v4 = vmul.f32 %v4802_v38, %v4796_v21  ;;  %v4806_v20 = vpop.permute.xlu0 %1586 }
 0x1d7   : > { %v1256_v11 = vpop.f32.mrb[118].mxu0  ;;  %5563 = vst [vmem:[#allocation32_spill] sm:$0xff] %v4806_v20  ;;  %v1677_v40 = vmul.f32 %v4806_v20, %v4800_v6  ;;  %v4811_v45 = vadd.f32 %v4503_v63, %v1328_v16 }
 0x1d8   : > { %v1330_v23 = vadd.f32 %v1256_v11, %v4628_v12  ;;  %v3256_v39 = vpop.f32.mrb[119].mxu0  ;;  %v1716_v15 = vadd.f32 %v1715_v9, %v1676_v4  ;;  %v4815_v11 = vadd.f32 %v4503_v63, %v1329_v28 }
 0x1d9   : > { %v4817_v39 = vpop.permute.xlu1 %1591 }
 0x1da   : > { %5564 = vst [vmem:[#allocation33_spill] sm:$0xff] %v4817_v39  ;;  %v1717_v19 = vadd.f32 %v1716_v15, %v1677_v40  ;;  %v1678_v20 = vmul.f32 %v4817_v39, %v4811_v45  ;;  %v4822_v16 = vpop.permute.xlu0 %1596  ;;  %v4827_v9 = vadd.f32 %v4503_v63, %v1330_v23 }
 0x1db   : > { %5565 = vst [vmem:[#allocation34_spill] sm:$0xff] %v4822_v16 }
 0x1dc   : > { %v1718_v28 = vadd.f32 %v1717_v19, %v1678_v20 }
 0x1dd   : > { %v1261_v12 = vpop.f32.mrb[120].mxu0 }
 0x1de   : > { %v1331_v57 = vadd.f32 %v1261_v12, %v4648_v54  ;;  %v3259_v56 = vpop.f32.mrb[121].mxu0  ;;  %v1679_v54 = vmul.f32 %v4822_v16, %v4815_v11  ;;  %v4837_v39 = vpop.permute.xlu0 %1606 }
 0x1df   : > { %v1264_v50 = vpop.f32.mrb[122].mxu0  ;;  %v4832_v56 = vpop.permute.xlu1 %1601  ;;  %5567 = vst [vmem:[#allocation36_spill] sm:$0xff] %v4837_v39 }
 0x1e0   : > { %v1332_v43 = vadd.f32 %v1264_v50, %v4656_v61  ;;  %v3260_v38 = vpop.f32.mrb[123].mxu0  ;;  %v4830_v4 = vadd.f32 %v4503_v63, %v1331_v57  ;;  %5566 = vst [vmem:[#allocation35_spill] sm:$0xff] %v4832_v56  ;;  %v1719_v40 = vadd.f32 %v1718_v28, %v1679_v54  ;;  %v1680_v15 = vmul.f32 %v4832_v56, %v4827_v9 }
 0x1e2   : > { %v1681_v19 = vmul.f32 %v4837_v39, %v4830_v4  ;;  %v4843_v20 = vadd.f32 %v4503_v63, %v1332_v43  ;;  %v1720_v57 = vadd.f32 %v1719_v40, %v1680_v15  ;;  %v4852_v56 = vpop.permute.xlu0 %1616 }
 0x1e3   : > { %v4848_v54 = vpop.permute.xlu1 %1611  ;;  %5569 = vst [vmem:[#allocation38_spill] sm:$0xff] %v4852_v56 }
 0x1e4   : > { %5568 = vst [vmem:[#allocation37_spill] sm:$0xff] %v4848_v54  ;;  %v1721_v28 = vadd.f32 %v1720_v57, %v1681_v19 }
 0x1e5   : > { %v1269_v12 = vpop.f32.mrb[124].mxu0 }
 0x1e6   : > { %v1333_v61 = vadd.f32 %v1269_v12, %v4676_v2  ;;  %v3263_v38 = vpop.f32.mrb[125].mxu0  ;;  %v1682_v12 = vmul.f32 %v4848_v54, %v4843_v20 }
 0x1e7   : > { %v1272_v50 = vpop.f32.mrb[126].mxu0  ;;  %v4864_v54 = vpop.permute.xlu1 %1621 }
 0x1e8   : > { %v1334_v23 = vadd.f32 %v1272_v50, %v4682_v46  ;;  %v3264_v16 = vpop.f32.mrb[127].mxu0  ;;  %v4846_v2 = vadd.f32 %v4503_v63, %v1333_v61  ;;  %v1722_v19 = vadd.f32 %v1721_v28, %v1682_v12  ;;  %5570 = vst [vmem:[#allocation39_spill] sm:$0xff] %v4864_v54 }
 0x1ea   : > { %v1683_v43 = vmul.f32 %v4852_v56, %v4846_v2  ;;  %v4858_v40 = vadd.f32 %v4503_v63, %v1334_v23 }
 0x1ec   : > { %v1723_v39 = vadd.f32 %v1722_v19, %v1683_v43 }
 0x1ed   : > { %v1277_v38 = vpop.f32.mrb[128].mxu0 }
 0x1ee   : > { %v1335_v46 = vadd.f32 %v1277_v38, %v4702_v27  ;;  %v3267_v16 = vpop.f32.mrb[129].mxu0  ;;  %v1684_v27 = vmul.f32 %v4864_v54, %v4858_v40  ;;  %v4868_v38 = vpop.permute.xlu0 %1626 }
 0x1ef   : > { %v1280_v61 = vpop.f32.mrb[130].mxu0  ;;  %5571 = vst [vmem:[#allocation40_spill] sm:$0xff] %v4868_v38 }
 0x1f0   : > { %v1336_v15 = vadd.f32 %v1280_v61, %v4712_v59  ;;  %v3268_v50 = vpop.f32.mrb[131].mxu0  ;;  %v4862_v57 = vadd.f32 %v4503_v63, %v1335_v46  ;;  %v1724_v46 = vadd.f32 %v1723_v39, %v1684_v27 }
 0x1f1   : > { %v4876_v50 = vpop.permute.xlu1 %1631 }
 0x1f2   : > { %v1685_v23 = vmul.f32 %v4868_v38, %v4862_v57  ;;  %v4873_v16 = vadd.f32 %v4503_v63, %v1336_v15  ;;  %5572 = vst [vmem:[#allocation41_spill] sm:$0xff] %v4876_v50  ;;  %v4884_v15 = vpop.permute.xlu0 %1636 }
 0x1f3   : > { %5573 = vst [vmem:[#allocation42_spill] sm:$0xff] %v4884_v15 }
 0x1f4   : > { %v1725_v56 = vadd.f32 %v1724_v46, %v1685_v23  ;;  %v1686_v38 = vmul.f32 %v4876_v50, %v4873_v16 }
 0x1f5   : > { %v1285_v59 = vpop.f32.mrb[132].mxu0 }
 0x1f6   : > { %v1337_v28 = vadd.f32 %v1285_v59, %v4730_v60  ;;  %v3271_v12 = vpop.f32.mrb[133].mxu0  ;;  %v1726_v27 = vadd.f32 %v1725_v56, %v1686_v38 }
 0x1f7   : > { %v1288_v61 = vpop.f32.mrb[134].mxu0  ;;  %v4891_v12 = vpop.permute.xlu1 %1641 }
 0x1f8   : > { %v4879_v43 = vadd.f32 %v4503_v63, %v1337_v28  ;;  %v1338_v19 = vadd.f32 %v1288_v61, %v4737_v42  ;;  %v3272_v54 = vpop.f32.mrb[135].mxu0  ;;  %5574 = vst [vmem:[#allocation43_spill] sm:$0xff] %v4891_v12 }
 0x1fa   : > { %v1687_v60 = vmul.f32 %v4884_v15, %v4879_v43  ;;  %v4889_v39 = vadd.f32 %v4503_v63, %v1338_v19  ;;  %v4899_v15 = vpop.permute.xlu0 %1646 }
 0x1fc   : > { %v1727_v54 = vadd.f32 %v1726_v27, %v1687_v60  ;;  %v1688_v23 = vmul.f32 %v4891_v12, %v4889_v39 }
 0x1fd   : > { %v1293_v59 = vpop.f32.mrb[136].mxu0 }
 0x1fe   : > { %v1339_v28 = vadd.f32 %v1293_v59, %v4755_v31  ;;  %v3275_v42 = vpop.f32.mrb[137].mxu0  ;;  %v1728_v38 = vadd.f32 %v1727_v54, %v1688_v23 }
 0x1ff   : > { %v1296_v46 = vpop.f32.mrb[138].mxu0 }
 0x200   : > { %v4897_v61 = vadd.f32 %v4503_v63, %v1339_v28  ;;  %v3276_v50 = vpop.f32.mrb[139].mxu0  ;;  %v4907_v63 = vld [vmem:[%s5477_s5] sm:$0xff] }
 0x201   : > { %v5575_v50 = vmov 0.0|0.0  }
 0x202   : > { %v1689_v56 = vmul.f32 %v4899_v15, %v4897_v61 }
 0x204   : > { %v1730_v19 = vsel %vm1729_vm5, %v1689_v56, 0.0  ;;  %v5577_v56 = vld [vmem:[#allocation3_spill] sm:$0xff] }
 0x205   : > { %v1731_v31 = vadd.f32 %v1730_v19, %v1728_v38  ;;  %v5579_v38 = vld [vmem:[#allocation5_spill] sm:$0xff]  ;;  %v1883_v19 = vlaneseq }
 0x207   : > { %v1732_v59 = vrot.slane %v1731_v31, 4 }
 0x209   : > { %v1733_v60 = vadd.f32 %v1732_v59, %v1731_v31  ;;  %v4932_v31 = vshrl.u32 %v1883_v19, 7 }
 0x20b   : > { %v1734_v27 = vrot.slane %v1733_v60, 2  ;;  %v5525_v59 = vsub.s32 0, %v4932_v31 }
 0x20d   : > { %v1735_v42 = vadd.f32 %v1734_v27, %v1733_v60  ;;  %v5580_v27 = vld [vmem:[#allocation13_spill] sm:$0xff] }
 0x20f   : > { %v1736_v12 = vrot.slane %v1735_v42, 1 }
 0x211   : > { %v1737_v46 = vadd.f32 %v1736_v12, %v1735_v42  ;;  %v5576_v12 = vld [vmem:[#allocation2_spill] sm:$0xff] }
 0x213   : > { %3310 = vmatmul.mubr.f32.vlgmr.msra.gmra.mrb[112].mxu1 %v1737_v46  ;;  %v5581_v46 = vld [vmem:[#allocation12_spill] sm:$0xff] }
 0x214   : > { %3313 = vmatpush3.msra.mxu1 %v4907_v63  ;;  %3314 = vmatprep.mubr.msk.f32.mxu1 %vm3521_vm1, %v5546_v36 }
 0x215   : > { %3381 = vmatprep.subr.bf16.mxu1 %v5575_v50 }
 0x2e6   : > { %v1804_v28 = vpop.f32.mrb[112].mxu1 }
 0x2e7   : > { %v1808_v54 = vmul.f32 0.00390625, %v1804_v28  ;;  %v3311_v23 = vpop.f32.mrb[113].mxu1 }
 0x2e9   : > { %3315 = vmatmul.mubr.msk.f32.vlgmr.msra.gmra.mrb[114].mxu1 %vm1809_vm6, %v1808_v54 }
 0x2ea   : > { %3383 = vmatpush3.bf16.msra.mxu1 %v4204_v55  ;;  %3349 = vmatprep.mubr.msk.f32.mxu1 %vm3521_vm1, %v5546_v36  ;;  %v5578_v55 = vld [vmem:[#allocation4_spill] sm:$0xff] }
 0x2eb   : > { %3384 = vmatprep.subr.bf16.mxu1 %v5575_v50 }
 0x2ee   : > { %3386 = vmatpush3.bf16.msra.mxu1 %v4256_v48 }
 0x2ef   : > { %3387 = vmatprep.subr.bf16.mxu1 %v5575_v50 }
 0x2f2   : > { %3389 = vmatpush3.bf16.msra.mxu1 %v4302_v8 }
 0x2f3   : > { %3390 = vmatprep.subr.bf16.mxu1 %v5575_v50 }
 0x2f6   : > { %3392 = vmatpush3.bf16.msra.mxu1 %v5576_v12 }
 0x2f7   : > { %3393 = vmatprep.subr.bf16.mxu1 %v5575_v50 }
 0x2fa   : > { %3395 = vmatpush3.bf16.msra.mxu1 %v5577_v56 }
 0x2fb   : > { %3396 = vmatprep.subr.bf16.mxu1 %v5575_v50 }
 0x2fe   : > { %3398 = vmatpush3.bf16.msra.mxu1 %v5578_v55 }
 0x2ff   : > { %3399 = vmatprep.subr.bf16.mxu1 %v5575_v50 }
 0x302   : > { %3401 = vmatpush3.bf16.msra.mxu1 %v5579_v38  ;;  %v5586_v38 = vld [vmem:[#allocation6_spill] sm:$0xff] }
 0x303   : > { %3402 = vmatprep.subr.bf16.mxu1 %v5575_v50  ;;  %v5582_v50 = vld [vmem:[#allocation14_spill] sm:$0xff] }
 0x306   : > { %3404 = vmatpush3.bf16.msra.mxu1 %v4552_v44 }
 0x307   : > { %3352 = vmatprep.subr.mxu1 %v5546_v36 }
 0x3bc   : > { %v1879_v48 = vpop.f32.mrb[114].mxu1 }
 0x3bd   : > { %v3316_v8 = vpop.f32.mrb[115].mxu1  ;;  %v4937_v60 = vrot.slane %v1879_v48, %v5525_v59 }
 0x3be   : > { %v5587_v8 = vld [vmem:[#allocation8_spill] sm:$0xff] }
 0x3bf   : > { %v4941_v42 = vsub.f32 %v5580_v27, %v4937_v60  ;;  %v4945_v44 = vsub.f32 %v5581_v46, %v4937_v60  ;;  %v4949_v28 = vsub.f32 %v5582_v50, %v4937_v60  ;;  %v4957_v12 = vsub.f32 %v4547_v52, %v4937_v60  ;;  %v5588_v50 = vld [vmem:[#allocation7_spill] sm:$0xff] }
 0x3c0   : > { %v4961_v56 = vsub.f32 %v4559_v30, %v4937_v60  ;;  %v4969_v27 = vsub.f32 %v4574_v14, %v4937_v60  ;;  %v4975_v52 = vsub.f32 %v4583_v7, %v4937_v60  ;;  %v4989_v7 = vsub.f32 %v4608_v0, %v4937_v60 }
 0x3c1   : > { %5583 = vst [vmem:[#allocation2_spill] sm:$0xff] %v4949_v28  ;;  %v1928_v54 = vmul.f32 %v4941_v42, %v4941_v42  ;;  %v1929_v23 = vmul.f32 %v4945_v44, %v4945_v44  ;;  %5584 = vst [vmem:[#allocation3_spill] sm:$0xff] %v4957_v12  ;;  %v1930_v55 = vmul.f32 %v4949_v28, %v4949_v28 }
 0x3c2   : > { %5585 = vst [vmem:[#allocation4_spill] sm:$0xff] %v4961_v56  ;;  %v1931_v46 = vmul.f32 %v4957_v12, %v4957_v12  ;;  %v1932_v30 = vmul.f32 %v4961_v56, %v4961_v56  ;;  %v1933_v14 = vmul.f32 %v4969_v27, %v4969_v27  ;;  %v1934_v56 = vmul.f32 %v4975_v52, %v4975_v52  ;;  %v5590_v12 = vld [vmem:[#allocation10_spill] sm:$0xff] }
 0x3c3   : > { %v1969_v48 = vmul.f32 %v1928_v54, %v5586_v38  ;;  %v1970_v19 = vmul.f32 %v1929_v23, %v5587_v8  ;;  %v1971_v59 = vmul.f32 %v1930_v55, %v5588_v50  ;;  %v4982_v54 = vsub.f32 %v4600_v47, %v4937_v60  ;;  %v5589_v23 = vld [vmem:[#allocation9_spill] sm:$0xff]  ;;  %v5591_v50 = vld [vmem:[#allocation11_spill] sm:$0xff] }
 0x3c4   : > { %v1972_v38 = vmul.f32 %v1931_v46, %v5589_v23  ;;  %v1973_v55 = vmul.f32 %v1932_v30, %v5590_v12  ;;  %v4996_v47 = vsub.f32 %v4625_v1, %v4937_v60  ;;  %v1974_v46 = vmul.f32 %v1933_v14, %v5591_v50  ;;  %v5592_v23 = vld [vmem:[#allocation15_spill] sm:$0xff]  ;;  %v5594_v50 = vld [vmem:[#allocation16_spill] sm:$0xff] }
 0x3c5   : > { %v2010_v28 = vadd.f32 %v1970_v19, %v1969_v48  ;;  %v1935_v19 = vmul.f32 %v4982_v54, %v4982_v54  ;;  %v5003_v0 = vsub.f32 %v4632_v62, %v4937_v60  ;;  %v1975_v12 = vmul.f32 %v1934_v56, %v5592_v23  ;;  %v5595_v23 = vld [vmem:[#allocation17_spill] sm:$0xff] }
 0x3c6   : > { %v5010_v1 = vsub.f32 %v4645_v13, %v4937_v60  ;;  %v5024_v13 = vsub.f32 %v4668_v18, %v4937_v60  ;;  %v5038_v18 = vsub.f32 %v4688_v58, %v4937_v60  ;;  %v5052_v58 = vsub.f32 %v4709_v35, %v4937_v60 }
 0x3c7   : > { %v2011_v8 = vadd.f32 %v2010_v28, %v1971_v59  ;;  %v1936_v28 = vmul.f32 %v4989_v7, %v4989_v7  ;;  %v1976_v14 = vmul.f32 %v1935_v19, %v4530_v22  ;;  %v5066_v35 = vsub.f32 %v4727_v34, %v4937_v60 }
 0x3c8   : > { %v5080_v34 = vsub.f32 %v4748_v37, %v4937_v60  ;;  %v5094_v37 = vsub.f32 %v4765_v29, %v4937_v60  ;;  %v5108_v29 = vsub.f32 %v4781_v32, %v4937_v60  ;;  %v5122_v32 = vsub.f32 %v4796_v21, %v4937_v60 }
 0x3c9   : > { %v2012_v48 = vadd.f32 %v2011_v8, %v1972_v38  ;;  %v1937_v38 = vmul.f32 %v4996_v47, %v4996_v47  ;;  %v1977_v56 = vmul.f32 %v1936_v28, %v5594_v50  ;;  %v5597_v50 = vld [vmem:[#allocation19_spill] sm:$0xff]  ;;  %v5136_v21 = vsub.f32 %v4811_v45, %v4937_v60 }
 0x3ca   : > { %v5150_v45 = vsub.f32 %v4827_v9, %v4937_v60  ;;  %v5164_v9 = vsub.f32 %v4843_v20, %v4937_v60  ;;  %v5178_v20 = vsub.f32 %v4858_v40, %v4937_v60  ;;  %v5192_v40 = vsub.f32 %v4873_v16, %v4937_v60 }
 0x3cb   : > { %v2013_v59 = vadd.f32 %v2012_v48, %v1973_v55  ;;  %v5593_v55 = vld [vmem:[#allocation21_spill] sm:$0xff]  ;;  %v1938_v48 = vmul.f32 %v5003_v0, %v5003_v0  ;;  %v1978_v22 = vmul.f32 %v1937_v38, %v5595_v23  ;;  %v5598_v23 = vld [vmem:[#allocation20_spill] sm:$0xff]  ;;  %v5206_v16 = vsub.f32 %v4897_v61, %v4937_v60 }
 0x3cc   : > { %v5017_v62 = vsub.f32 %v5593_v55, %v4937_v60  ;;  %v5596_v55 = vld [vmem:[#allocation18_spill] sm:$0xff] }
 0x3cd   : > { %v2014_v30 = vadd.f32 %v2013_v59, %v1974_v46  ;;  %v1939_v59 = vmul.f32 %v5010_v1, %v5010_v1  ;;  %v1979_v28 = vmul.f32 %v1938_v48, %v5596_v55  ;;  %5617 = vst [vmem:[#allocation13_spill] sm:$0xff] %v5206_v16  ;;  %v1968_v61 = vmul.f32 %v5206_v16, %v5206_v16 }
 0x3cf   : > { %v2015_v8 = vadd.f32 %v2014_v30, %v1975_v12  ;;  %v5031_v12 = vsub.f32 %v4673_v51, %v4937_v60  ;;  %v1940_v30 = vmul.f32 %v5017_v62, %v5017_v62  ;;  %v1980_v38 = vmul.f32 %v1939_v59, %v5597_v50 }
 0x3d0   : > { %v5045_v51 = vsub.f32 %v4696_v53, %v4937_v60  ;;  %v5059_v53 = vsub.f32 %v4715_v49, %v4937_v60  ;;  %v1945_v50 = vmul.f32 %v5052_v58, %v5052_v58 }
 0x3d1   : > { %v2016_v46 = vadd.f32 %v2015_v8, %v1976_v14  ;;  %v1941_v8 = vmul.f32 %v5024_v13, %v5024_v13  ;;  %v1981_v48 = vmul.f32 %v1940_v30, %v5598_v23 }
 0x3d2   : > { %v1946_v23 = vmul.f32 %v5059_v53, %v5059_v53 }
 0x3d3   : > { %v2017_v19 = vadd.f32 %v2016_v46, %v1977_v56  ;;  %v1942_v46 = vmul.f32 %v5031_v12, %v5031_v12  ;;  %v1982_v59 = vmul.f32 %v1941_v8, %v4638_v5 }
 0x3d5   : > { %v2018_v14 = vadd.f32 %v2017_v19, %v1978_v22  ;;  %v1943_v19 = vmul.f32 %v5038_v18, %v5038_v18  ;;  %v1983_v30 = vmul.f32 %v1942_v46, %v4660_v3 }
 0x3d7   : > { %v2019_v56 = vadd.f32 %v2018_v14, %v1979_v28  ;;  %v1944_v28 = vmul.f32 %v5045_v51, %v5045_v51 }
 0x3d9   : > { %v2020_v22 = vadd.f32 %v2019_v56, %v1980_v38  ;;  %v5599_v38 = vld [vmem:[#allocation22_spill] sm:$0xff]  ;;  %v5600_v56 = vld [vmem:[#allocation27_spill] sm:$0xff] }
 0x3da   : > { %v1984_v5 = vmul.f32 %v1943_v19, %v5599_v38  ;;  %v5073_v49 = vsub.f32 %v5600_v56, %v4937_v60  ;;  %v5603_v38 = vld [vmem:[#allocation25_spill] sm:$0xff]  ;;  %v5604_v56 = vld [vmem:[#allocation26_spill] sm:$0xff] }
 0x3db   : > { %v2021_v55 = vadd.f32 %v2020_v22, %v1981_v48  ;;  %v5601_v48 = vld [vmem:[#allocation23_spill] sm:$0xff]  ;;  %v1947_v22 = vmul.f32 %v5066_v35, %v5066_v35 }
 0x3dc   : > { %v1985_v3 = vmul.f32 %v1944_v28, %v5601_v48  ;;  %v1987_v28 = vmul.f32 %v1946_v23, %v5603_v38 }
 0x3dd   : > { %v2022_v14 = vadd.f32 %v2021_v55, %v1982_v59  ;;  %v5602_v59 = vld [vmem:[#allocation24_spill] sm:$0xff] }
 0x3de   : > { %v1986_v19 = vmul.f32 %v1945_v50, %v5602_v59  ;;  %v1988_v50 = vmul.f32 %v1947_v22, %v5604_v56 }
 0x3df   : > { %v2023_v8 = vadd.f32 %v2022_v14, %v1983_v30  ;;  %v5087_v30 = vsub.f32 %v4752_v24, %v4937_v60  ;;  %v1948_v14 = vmul.f32 %v5073_v49, %v5073_v49  ;;  %v5101_v24 = vsub.f32 %v4768_v10, %v4937_v60 }
 0x3e0   : > { %v5115_v10 = vsub.f32 %v4784_v33, %v4937_v60  ;;  %v5129_v33 = vsub.f32 %v4800_v6, %v4937_v60  ;;  %v5143_v6 = vsub.f32 %v4815_v11, %v4937_v60  ;;  %v5157_v11 = vsub.f32 %v4830_v4, %v4937_v60 }
 0x3e1   : > { %v2024_v46 = vadd.f32 %v2023_v8, %v1984_v5  ;;  %v1949_v8 = vmul.f32 %v5080_v34, %v5080_v34  ;;  %v1952_v38 = vmul.f32 %v5101_v24, %v5101_v24  ;;  %v5171_v4 = vsub.f32 %v4846_v2, %v4937_v60 }
 0x3e2   : > { %v1954_v56 = vmul.f32 %v5115_v10, %v5115_v10  ;;  %v5185_v2 = vsub.f32 %v4862_v57, %v4937_v60  ;;  %v5199_v57 = vsub.f32 %v4879_v43, %v4937_v60 }
 0x3e3   : > { %v2025_v55 = vadd.f32 %v2024_v46, %v1985_v3  ;;  %v1950_v3 = vmul.f32 %v5087_v30, %v5087_v30  ;;  %v5605_v46 = vld [vmem:[#allocation28_spill] sm:$0xff]  ;;  %v1990_v22 = vmul.f32 %v1949_v8, %v4743_v25 }
 0x3e4   : > { %v1989_v23 = vmul.f32 %v1948_v14, %v5605_v46  ;;  %5615 = vst [vmem:[#allocation5_spill] sm:$0xff] %v5199_v57 }
 0x3e5   : > { %v2026_v5 = vadd.f32 %v2025_v55, %v1986_v19  ;;  %v1951_v19 = vmul.f32 %v5094_v37, %v5094_v37  ;;  %v1991_v14 = vmul.f32 %v1950_v3, %v4760_v41  ;;  %v1993_v41 = vmul.f32 %v1952_v38, %v4775_v26  ;;  %v5606_v3 = vld [vmem:[#allocation29_spill] sm:$0xff] }
 0x3e7   : > { %v2027_v48 = vadd.f32 %v2026_v5, %v1987_v28  ;;  %v1953_v5 = vmul.f32 %v5108_v29, %v5108_v29  ;;  %v1992_v25 = vmul.f32 %v1951_v19, %v4770_v17 }
 0x3e9   : > { %v2028_v59 = vadd.f32 %v2027_v48, %v1988_v50  ;;  %v1955_v48 = vmul.f32 %v5122_v32, %v5122_v32  ;;  %v1994_v17 = vmul.f32 %v1953_v5, %v5606_v3  ;;  %v5609_v5 = vld [vmem:[#allocation32_spill] sm:$0xff]  ;;  %v1960_v3 = vmul.f32 %v5157_v11, %v5157_v11 }
 0x3eb   : > { %v2029_v55 = vadd.f32 %v2028_v59, %v1989_v23  ;;  %v1956_v23 = vmul.f32 %v5129_v33, %v5129_v33  ;;  %v5607_v59 = vld [vmem:[#allocation30_spill] sm:$0xff] }
 0x3ec   : > { %v1995_v26 = vmul.f32 %v1954_v56, %v5607_v59  ;;  %v1959_v56 = vmul.f32 %v5150_v45, %v5150_v45  ;;  %v1961_v59 = vmul.f32 %v5164_v9, %v5164_v9 }
 0x3ed   : > { %v2030_v28 = vadd.f32 %v2029_v55, %v1990_v22  ;;  %v1957_v22 = vmul.f32 %v5136_v21, %v5136_v21  ;;  %v5608_v55 = vld [vmem:[#allocation31_spill] sm:$0xff] }
 0x3ee   : > { %v1996_v38 = vmul.f32 %v1955_v48, %v5608_v55  ;;  %v1962_v55 = vmul.f32 %v5171_v4, %v5171_v4 }
 0x3ef   : > { %v2031_v8 = vadd.f32 %v2030_v28, %v1991_v14  ;;  %v1958_v28 = vmul.f32 %v5143_v6, %v5143_v6 }
 0x3f1   : > { %v2032_v50 = vadd.f32 %v2031_v8, %v1992_v25  ;;  %v1997_v25 = vmul.f32 %v1956_v23, %v5609_v5  ;;  %v1963_v5 = vmul.f32 %v5178_v20, %v5178_v20 }
 0x3f3   : > { %v2033_v46 = vadd.f32 %v2032_v50, %v1993_v41  ;;  %v5610_v41 = vld [vmem:[#allocation33_spill] sm:$0xff] }
 0x3f4   : > { %v1998_v50 = vmul.f32 %v1957_v22, %v5610_v41  ;;  %v1964_v41 = vmul.f32 %v5185_v2, %v5185_v2 }
 0x3f5   : > { %v2034_v19 = vadd.f32 %v2033_v46, %v1994_v17  ;;  %v5611_v17 = vld [vmem:[#allocation34_spill] sm:$0xff] }
 0x3f6   : > { %v1999_v46 = vmul.f32 %v1958_v28, %v5611_v17  ;;  %v5210_v17 = vsub.f32 %v4889_v39, %v4937_v60  ;;  %v5621_v39 = vld [vmem:[#allocation41_spill] sm:$0xff] }
 0x3f7   : > { %v2035_v14 = vadd.f32 %v2034_v19, %v1995_v26  ;;  %v5612_v26 = vld [vmem:[#allocation35_spill] sm:$0xff] }
 0x3f8   : > { %v2000_v19 = vmul.f32 %v1959_v56, %v5612_v26  ;;  %5618 = vst [vmem:[#allocation12_spill] sm:$0xff] %v5210_v17  ;;  %v1966_v26 = vmul.f32 %v5199_v57, %v5199_v57 }
 0x3f9   : > { %v2036_v8 = vadd.f32 %v2035_v14, %v1996_v38  ;;  %v5613_v38 = vld [vmem:[#allocation36_spill] sm:$0xff] }
 0x3fa   : > { %v2001_v14 = vmul.f32 %v1960_v3, %v5613_v38  ;;  %v1967_v38 = vmul.f32 %v5210_v17, %v5210_v17 }
 0x3fb   : > { %v2037_v48 = vadd.f32 %v2036_v8, %v1997_v25  ;;  %v5614_v25 = vld [vmem:[#allocation37_spill] sm:$0xff] }
 0x3fc   : > { %v2002_v8 = vmul.f32 %v1961_v59, %v5614_v25 }
 0x3fd   : > { %v2038_v23 = vadd.f32 %v2037_v48, %v1998_v50  ;;  %v5616_v50 = vld [vmem:[#allocation38_spill] sm:$0xff] }
 0x3fe   : > { %v2003_v48 = vmul.f32 %v1962_v55, %v5616_v50 }
 0x3ff   : > { %v2039_v22 = vadd.f32 %v2038_v23, %v1999_v46  ;;  %v1965_v46 = vmul.f32 %v5192_v40, %v5192_v40  ;;  %v5619_v23 = vld [vmem:[#allocation39_spill] sm:$0xff] }
 0x400   : > { %v2004_v43 = vmul.f32 %v1963_v5, %v5619_v23  ;;  %v2009_v5 = vmul.f32 %v1968_v61, %v4899_v15 }
 0x401   : > { %v2040_v28 = vadd.f32 %v2039_v22, %v2000_v19  ;;  %v5620_v19 = vld [vmem:[#allocation40_spill] sm:$0xff]  ;;  %v2006_v60 = vmul.f32 %v1965_v46, %v5621_v39  ;;  %v5624_v39 = vsub.s32 0, %v4932_v31 }
 0x402   : > { %v2005_v22 = vmul.f32 %v1964_v41, %v5620_v19  ;;  %v2049_v41 = vsel %vm1729_vm5, %v2009_v5, 0.0 }
 0x403   : > { %v2041_v56 = vadd.f32 %v2040_v28, %v2001_v14  ;;  %v5622_v28 = vld [vmem:[#allocation42_spill] sm:$0xff] }
 0x404   : > { %v2007_v25 = vmul.f32 %v1966_v26, %v5622_v28  ;;  %v5627_v28 = vld [vmem:[#allocation4_spill] sm:$0xff] }
 0x405   : > { %v2042_v3 = vadd.f32 %v2041_v56, %v2002_v8  ;;  %v5623_v56 = vld [vmem:[#allocation43_spill] sm:$0xff] }
 0x406   : > { %v2008_v50 = vmul.f32 %v1967_v38, %v5623_v56 }
 0x407   : > { %v2043_v59 = vadd.f32 %v2042_v3, %v2003_v48 }
 0x409   : > { %v2044_v55 = vadd.f32 %v2043_v59, %v2004_v43 }
 0x40b   : > { %v2045_v14 = vadd.f32 %v2044_v55, %v2005_v22 }
 0x40d   : > { %v2046_v8 = vadd.f32 %v2045_v14, %v2006_v60 }
 0x40f   : > { %v2047_v48 = vadd.f32 %v2046_v8, %v2007_v25 }
 0x411   : > { %v2048_v3 = vadd.f32 %v2047_v48, %v2008_v50 }
 0x413   : > { %v2050_v23 = vadd.f32 %v2049_v41, %v2048_v3 }
 0x415   : > { %v2051_v43 = vrot.slane %v2050_v23, 4 }
 0x417   : > { %v2052_v59 = vadd.f32 %v2051_v43, %v2050_v23  ;;  %v5629_v43 = vld [vmem:[#allocation12_spill] sm:$0xff] }
 0x419   : > { %v2053_v19 = vrot.slane %v2052_v59, 2 }
 0x41b   : > { %v2054_v16 = vadd.f32 %v2053_v19, %v2052_v59  ;;  %v5630_v19 = vld [vmem:[#allocation13_spill] sm:$0xff] }
 0x41d   : > { %v2055_v17 = vrot.slane %v2054_v16, 1 }
 0x41f   : > { %v2056_v57 = vadd.f32 %v2055_v17, %v2054_v16  ;;  %v5625_v16 = vld [vmem:[#allocation2_spill] sm:$0xff] }
 0x421   : > { %3350 = vmatmul.mubr.f32.vlgmr.msra.gmra.mrb[116].mxu1 %v2056_v57 }
 0x422   : > { %3353 = vmatpush3.msra.mxu1 %v4907_v63  ;;  %3354 = vmatprep.mubr.msk.f32.mxu1 %vm3521_vm1, %v5546_v36  ;;  %v5626_v36 = vld [vmem:[#allocation3_spill] sm:$0xff] }
 0x4f4   : > { %v2123_v15 = vpop.f32.mrb[116].mxu1 }
 0x4f5   : > { %v2127_v46 = vmul.f32 0.00390625, %v2123_v15  ;;  %v3351_v26 = vpop.f32.mrb[117].mxu1 }
 0x4f7   : > { %v2128_v22 = vadd.f32 1e-05, %v2127_v46 }
 0x4f9   : > { %3426 = vrsqrt.f32 %v2128_v22 }
 0x503   : > { %v3427_v55 = vpop.eup %3426 }
 0x504   : > { %3355 = vmatmul.mubr.msk.f32.vlgmr.msra.gmra.mrb[118].mxu1 %vm1809_vm6, %v3427_v55 }
 0x5d7   : > { %v2199_v61 = vpop.f32.mrb[118].mxu1 }
 0x5d8   : > { %v3356_v38 = vpop.f32.mrb[119].mxu1  ;;  %v2206_v60 = vrot.slane %v2199_v61, %v5624_v39 }
 0x5da   : > { %v2207_v57 = vmul.f32 %v2206_v60, %v4941_v42  ;;  %v2208_v63 = vmul.f32 %v2206_v60, %v4945_v44  ;;  %v2209_v17 = vmul.f32 %v2206_v60, %v5625_v16  ;;  %v2210_v14 = vmul.f32 %v2206_v60, %v5626_v36 }
 0x5db   : > { %v2211_v25 = vmul.f32 %v2206_v60, %v5627_v28  ;;  %v2212_v8 = vmul.f32 %v2206_v60, %v4969_v27  ;;  %v2213_v5 = vmul.f32 %v2206_v60, %v4975_v52  ;;  %v2214_v56 = vmul.f32 %v2206_v60, %v4982_v54 }
 0x5dc   : > { %v2215_v50 = vmul.f32 %v2206_v60, %v4989_v7  ;;  %v2216_v31 = vmul.f32 %v2206_v60, %v4996_v47  ;;  %v2217_v42 = vmul.f32 %v2206_v60, %v5003_v0  ;;  %v2218_v44 = vmul.f32 %v2206_v60, %v5010_v1 }
 0x5dd   : > { %v2219_v48 = vmul.f32 %v2206_v60, %v5017_v62  ;;  %v2220_v3 = vmul.f32 %v2206_v60, %v5024_v13  ;;  %v2221_v41 = vmul.f32 %v2206_v60, %v5031_v12  ;;  %v2222_v27 = vmul.f32 %v2206_v60, %v5038_v18 }
 0x5de   : > { %v2223_v52 = vmul.f32 %v2206_v60, %v5045_v51  ;;  %v2224_v54 = vmul.f32 %v2206_v60, %v5052_v58  ;;  %v2225_v7 = vmul.f32 %v2206_v60, %v5059_v53  ;;  %v2226_v47 = vmul.f32 %v2206_v60, %v5066_v35 }
 0x5df   : > { %v2227_v0 = vmul.f32 %v2206_v60, %v5073_v49  ;;  %v2228_v1 = vmul.f32 %v2206_v60, %v5080_v34  ;;  %v2229_v62 = vmul.f32 %v2206_v60, %v5087_v30  ;;  %v2230_v13 = vmul.f32 %v2206_v60, %v5094_v37  ;;  %v2849_v49 = vld [vmem:[%s5474_s2 + $0x1] ss:$0 sm:$0xff] }
 0x5e0   : > { %v2231_v12 = vmul.f32 %v2206_v60, %v5101_v24  ;;  %v2232_v18 = vmul.f32 %v2206_v60, %v5108_v29  ;;  %v2233_v51 = vmul.f32 %v2206_v60, %v5115_v10  ;;  %v2234_v58 = vmul.f32 %v2206_v60, %v5122_v32 }
 0x5e1   : > { %v2235_v53 = vmul.f32 %v2206_v60, %v5129_v33  ;;  %v2236_v35 = vmul.f32 %v2206_v60, %v5136_v21  ;;  %v2237_v34 = vmul.f32 %v2206_v60, %v5143_v6  ;;  %v2238_v30 = vmul.f32 %v2206_v60, %v5150_v45  ;;  %v5628_v21 = vld [vmem:[#allocation5_spill] sm:$0xff] }
 0x5e2   : > { %v2239_v37 = vmul.f32 %v2206_v60, %v5157_v11  ;;  %v2240_v24 = vmul.f32 %v2206_v60, %v5164_v9  ;;  %v2241_v29 = vmul.f32 %v2206_v60, %v5171_v4  ;;  %v2242_v10 = vmul.f32 %v2206_v60, %v5178_v20 }
 0x5e3   : > { %v2243_v32 = vmul.f32 %v2206_v60, %v5185_v2  ;;  %v2244_v33 = vmul.f32 %v2206_v60, %v5192_v40  ;;  %v2245_v23 = vmul.f32 %v2206_v60, %v5628_v21  ;;  %v2246_v59 = vmul.f32 %v2206_v60, %v5629_v43 }
 0x5e4   : > { %v2247_v6 = vmul.f32 %v2206_v60, %v5630_v19  ;;  %v2253_v15 = vmul.f32 %v2849_v49, %v2207_v57  ;;  %v2254_v45 = vmul.f32 %v2849_v49, %v2208_v63  ;;  %v2255_v46 = vmul.f32 %v2849_v49, %v2209_v17 }
 0x5e5   : > { %v2256_v11 = vmul.f32 %v2849_v49, %v2210_v14  ;;  %v2257_v26 = vmul.f32 %v2849_v49, %v2211_v25  ;;  %v2258_v9 = vmul.f32 %v2849_v49, %v2212_v8  ;;  %v2259_v22 = vmul.f32 %v2849_v49, %v2213_v5 }
 0x5e6   : > { %v2260_v4 = vmul.f32 %v2849_v49, %v2214_v56  ;;  %v2261_v55 = vmul.f32 %v2849_v49, %v2215_v50  ;;  %v2262_v20 = vmul.f32 %v2849_v49, %v2216_v31  ;;  %v2263_v61 = vmul.f32 %v2849_v49, %v2217_v42 }
 0x5e7   : > { %v2264_v2 = vmul.f32 %v2849_v49, %v2218_v44  ;;  %v2265_v38 = vmul.f32 %v2849_v49, %v2219_v48  ;;  %v2266_v40 = vmul.f32 %v2849_v49, %v2220_v3  ;;  %v2267_v39 = vmul.f32 %v2849_v49, %v2221_v41  ;;  %v5280_v3 = vld [vmem:[%s5474_s2 + $0x2] ss:$0 sm:$0xff] }
 0x5e8   : > { %v2268_v16 = vmul.f32 %v2849_v49, %v2222_v27  ;;  %v2269_v36 = vmul.f32 %v2849_v49, %v2223_v52  ;;  %v2270_v28 = vmul.f32 %v2849_v49, %v2224_v54  ;;  %v2271_v21 = vmul.f32 %v2849_v49, %v2225_v7 }
 0x5e9   : > { %v2272_v60 = vmul.f32 %v2849_v49, %v2226_v47  ;;  %v2273_v57 = vmul.f32 %v2849_v49, %v2227_v0  ;;  %v2274_v63 = vmul.f32 %v2849_v49, %v2228_v1  ;;  %v2275_v17 = vmul.f32 %v2849_v49, %v2229_v62 }
 0x5ea   : > { %v2276_v14 = vmul.f32 %v2849_v49, %v2230_v13  ;;  %v2277_v25 = vmul.f32 %v2849_v49, %v2231_v12  ;;  %v2278_v8 = vmul.f32 %v2849_v49, %v2232_v18  ;;  %v2279_v5 = vmul.f32 %v2849_v49, %v2233_v51 }
 0x5eb   : > { %v2280_v56 = vmul.f32 %v2849_v49, %v2234_v58  ;;  %v2281_v50 = vmul.f32 %v2849_v49, %v2235_v53  ;;  %v2282_v31 = vmul.f32 %v2849_v49, %v2236_v35  ;;  %v2283_v42 = vmul.f32 %v2849_v49, %v2237_v34 }
 0x5ec   : > { %v2284_v44 = vmul.f32 %v2849_v49, %v2238_v30  ;;  %v2285_v48 = vmul.f32 %v2849_v49, %v2239_v37  ;;  %v2286_v41 = vmul.f32 %v2849_v49, %v2240_v24  ;;  %v2287_v27 = vmul.f32 %v2849_v49, %v2241_v29 }
 0x5ed   : > { %v2288_v52 = vmul.f32 %v2849_v49, %v2242_v10  ;;  %v5282_v54 = vmul.f32 %v2849_v49, %v2243_v32  ;;  %v5284_v7 = vmul.f32 %v2849_v49, %v2244_v33  ;;  %v5286_v47 = vmul.f32 %v2849_v49, %v2245_v23 }
 0x5ee   : > { %v5288_v0 = vmul.f32 %v2849_v49, %v2246_v59  ;;  %v5290_v1 = vmul.f32 %v2849_v49, %v2247_v6  ;;  %v2299_v62 = vadd.f32 %v5280_v3, %v2253_v15  ;;  %v2300_v13 = vadd.f32 %v5280_v3, %v2254_v45 }
 0x5ef   : > { %v2301_v12 = vadd.f32 %v5280_v3, %v2255_v46  ;;  %v2302_v18 = vadd.f32 %v5280_v3, %v2256_v11  ;;  %v2303_v51 = vadd.f32 %v5280_v3, %v2257_v26  ;;  %v2304_v58 = vadd.f32 %v5280_v3, %v2258_v9 }
 0x5f0   : > { %v2305_v53 = vadd.f32 %v5280_v3, %v2259_v22  ;;  %v2306_v35 = vadd.f32 %v5280_v3, %v2260_v4  ;;  %v2307_v34 = vadd.f32 %v5280_v3, %v2261_v55  ;;  %v2308_v49 = vadd.f32 %v5280_v3, %v2262_v20 }
 0x5f1   : > { %v2309_v30 = vadd.f32 %v5280_v3, %v2263_v61  ;;  %v2310_v37 = vadd.f32 %v5280_v3, %v2264_v2  ;;  %v2311_v24 = vadd.f32 %v5280_v3, %v2265_v38  ;;  %v2312_v29 = vadd.f32 %v5280_v3, %v2266_v40 }
 0x5f2   : > { %v2313_v10 = vadd.f32 %v5280_v3, %v2267_v39  ;;  %v2314_v32 = vadd.f32 %v5280_v3, %v2268_v16  ;;  %v2315_v33 = vadd.f32 %v5280_v3, %v2269_v36  ;;  %v2316_v23 = vadd.f32 %v5280_v3, %v2270_v28 }
 0x5f3   : > { %v2317_v43 = vadd.f32 %v5280_v3, %v2271_v21  ;;  %v2318_v59 = vadd.f32 %v5280_v3, %v2272_v60  ;;  %v2319_v19 = vadd.f32 %v5280_v3, %v2273_v57  ;;  %v5313_v6 = vpack.c.bf16 %v2300_v13, %v2299_v62 }
 0x5f4   : > { %v5315_v15 = vpack.c.bf16 %v2302_v18, %v2301_v12  ;;  %v5317_v45 = vpack.c.bf16 %v2304_v58, %v2303_v51  ;;  %v2320_v46 = vadd.f32 %v5280_v3, %v2274_v63  ;;  %v2321_v11 = vadd.f32 %v5280_v3, %v2275_v17 }
 0x5f5   : > { %v2322_v26 = vadd.f32 %v5280_v3, %v2276_v14  ;;  %v5322_v9 = vpack.c.bf16 %v2306_v35, %v2305_v53  ;;  %v2323_v22 = vadd.f32 %v5280_v3, %v2277_v25  ;;  %v2324_v4 = vadd.f32 %v5280_v3, %v2278_v8 }
 0x5f6   : > { %v2325_v55 = vadd.f32 %v5280_v3, %v2279_v5  ;;  %v5327_v20 = vpack.c.bf16 %v2308_v49, %v2307_v34  ;;  %v2326_v61 = vadd.f32 %v5280_v3, %v2280_v56  ;;  %v2327_v2 = vadd.f32 %v5280_v3, %v2281_v50 }
 0x5f7   : > { %v2328_v38 = vadd.f32 %v5280_v3, %v2282_v31  ;;  %v5332_v40 = vpack.c.bf16 %v2310_v37, %v2309_v30  ;;  %v5334_v39 = vpack.c.bf16 %v2312_v29, %v2311_v24  ;;  %v2851_v16 = vmul.bf16 3216621497, %v5313_v6 }
 0x5f8   : > { %v2852_v36 = vmul.bf16 3216621497, %v5315_v15  ;;  %v2853_v28 = vmul.bf16 3216621497, %v5317_v45  ;;  %v2329_v21 = vadd.f32 %v5280_v3, %v2283_v42  ;;  %v2330_v60 = vadd.f32 %v5280_v3, %v2284_v44 }
 0x5f9   : > { %v5341_v57 = vpack.c.bf16 %v2314_v32, %v2313_v10  ;;  %v2854_v63 = vmul.bf16 3216621497, %v5322_v9  ;;  %v2331_v17 = vadd.f32 %v5280_v3, %v2285_v48  ;;  %v5345_v14 = vpack.c.bf16 %v2316_v23, %v2315_v33 }
 0x5fa   : > { %3428 = vpow.bf16 %v2851_v16  ;;  %v2855_v25 = vmul.bf16 3216621497, %v5327_v20  ;;  %v2332_v8 = vadd.f32 %v5280_v3, %v2286_v41  ;;  %v5349_v5 = vpack.c.bf16 %v2318_v59, %v2317_v43 }
 0x5fb   : > { %3430 = vpow.bf16 %v2852_v36  ;;  %v2856_v56 = vmul.bf16 3216621497, %v5332_v40  ;;  %v2333_v50 = vadd.f32 %v5280_v3, %v2287_v27  ;;  %v5353_v31 = vpack.c.bf16 %v2320_v46, %v2319_v19 }
 0x5fc   : > { %3432 = vpow.bf16 %v2853_v28  ;;  %v2857_v42 = vmul.bf16 3216621497, %v5334_v39  ;;  %v2334_v44 = vadd.f32 %v5280_v3, %v2288_v52  ;;  %v5357_v48 = vpack.c.bf16 %v2322_v26, %v2321_v11 }
 0x5fd   : > { %3434 = vpow.bf16 %v2854_v63  ;;  %v2858_v62 = vmul.bf16 3216621497, %v5341_v57  ;;  %v2335_v41 = vadd.f32 %v5280_v3, %v5282_v54  ;;  %v5362_v13 = vpack.c.bf16 %v2324_v4, %v2323_v22 }
 0x5fe   : > { %3436 = vpow.bf16 %v2855_v25  ;;  %v2859_v27 = vmul.bf16 3216621497, %v5345_v14  ;;  %v2336_v12 = vadd.f32 %v5280_v3, %v5284_v7  ;;  %v5367_v18 = vpack.c.bf16 %v2326_v61, %v2325_v55 }
 0x5ff   : > { %3438 = vpow.bf16 %v2856_v56  ;;  %v2860_v52 = vmul.bf16 3216621497, %v5349_v5  ;;  %v2337_v51 = vadd.f32 %v5280_v3, %v5286_v47  ;;  %v5372_v58 = vpack.c.bf16 %v2328_v38, %v2327_v2 }
 0x600   : > { %3440 = vpow.bf16 %v2857_v42  ;;  %v2861_v54 = vmul.bf16 3216621497, %v5353_v31  ;;  %v2338_v53 = vadd.f32 %v5280_v3, %v5288_v0  ;;  %v5377_v35 = vpack.c.bf16 %v2330_v60, %v2329_v21 }
 0x601   : > { %3442 = vpow.bf16 %v2858_v62  ;;  %v2862_v7 = vmul.bf16 3216621497, %v5357_v48  ;;  %v2339_v34 = vadd.f32 %v5280_v3, %v5290_v1  ;;  %v5382_v49 = vpack.c.bf16 %v2332_v8, %v2331_v17 }
 0x602   : > { %3444 = vpow.bf16 %v2859_v27  ;;  %v2863_v47 = vmul.bf16 3216621497, %v5362_v13  ;;  %v5385_v30 = vpack.c.bf16 %v2334_v44, %v2333_v50  ;;  %v2864_v37 = vmul.bf16 3216621497, %v5367_v18 }
 0x603   : > { %3446 = vpow.bf16 %v2860_v52  ;;  %v5388_v24 = vpack.c.bf16 %v2336_v12, %v2335_v41  ;;  %v2865_v0 = vmul.bf16 3216621497, %v5372_v58  ;;  %v5391_v10 = vpack.c.bf16 %v2338_v53, %v2337_v51 }
 0x604   : > { %3448 = vpow.bf16 %v2861_v54  ;;  %v2866_v3 = vmul.bf16 3216621497, %v5377_v35  ;;  %v5394_v32 = vpack.c.bf16 %v2339_v34, %v2339_v34  ;;  %v2867_v33 = vmul.bf16 3216621497, %v5382_v49 }
 0x605   : > { %v3429_v29 = vpop.eup %3428  ;;  %3450 = vpow.bf16 %v2862_v7  ;;  %v2868_v43 = vmul.bf16 3216621497, %v5385_v30  ;;  %v2869_v19 = vmul.bf16 3216621497, %v5388_v24  ;;  %v2870_v11 = vmul.bf16 3216621497, %v5391_v10 }
 0x606   : > { %v3431_v1 = vpop.eup %3430  ;;  %3452 = vpow.bf16 %v2863_v47  ;;  %v2871_v22 = vmul.bf16 3216621497, %v5394_v32  ;;  %v2445_v55 = vadd.bf16 1065369472, %v3429_v29 }
 0x607   : > { %v3433_v23 = vpop.eup %3432  ;;  %3454 = vpow.bf16 %v2864_v37  ;;  %v2446_v2 = vadd.bf16 1065369472, %v3431_v1 }
 0x608   : > { %v3435_v59 = vpop.eup %3434  ;;  %3456 = vpow.bf16 %v2865_v0  ;;  %v2447_v16 = vadd.bf16 1065369472, %v3433_v23 }
 0x609   : > { %v3437_v46 = vpop.eup %3436  ;;  %3458 = vpow.bf16 %v2866_v3  ;;  %v2448_v28 = vadd.bf16 1065369472, %v3435_v59 }
 0x60a   : > { %v3439_v26 = vpop.eup %3438  ;;  %3460 = vpow.bf16 %v2867_v33  ;;  %v2449_v60 = vadd.bf16 1065369472, %v3437_v46 }
 0x60b   : > { %v3441_v4 = vpop.eup %3440  ;;  %3462 = vpow.bf16 %v2868_v43  ;;  %v2450_v17 = vadd.bf16 1065369472, %v3439_v26 }
 0x60c   : > { %v3443_v61 = vpop.eup %3442  ;;  %3464 = vpow.bf16 %v2869_v19  ;;  %v2451_v8 = vadd.bf16 1065369472, %v3441_v4 }
 0x60d   : > { %v3445_v38 = vpop.eup %3444  ;;  %3466 = vpow.bf16 %v2870_v11  ;;  %v2452_v50 = vadd.bf16 1065369472, %v3443_v61 }
 0x60e   : > { %v3447_v36 = vpop.eup %3446  ;;  %3468 = vpow.bf16 %v2871_v22  ;;  %v2453_v44 = vadd.bf16 1065369472, %v3445_v38 }
 0x60f   : > { %v3449_v21 = vpop.eup %3448  ;;  %3470 = vrcp.bf16 %v2445_v55  ;;  %v2454_v41 = vadd.bf16 1065369472, %v3447_v36 }
 0x610   : > { %v3451_v63 = vpop.eup %3450  ;;  %3472 = vrcp.bf16 %v2446_v2  ;;  %v2455_v12 = vadd.bf16 1065369472, %v3449_v21 }
 0x611   : > { %v3453_v25 = vpop.eup %3452  ;;  %3474 = vrcp.bf16 %v2447_v16  ;;  %v2456_v51 = vadd.bf16 1065369472, %v3451_v63 }
 0x612   : > { %v3455_v56 = vpop.eup %3454  ;;  %3476 = vrcp.bf16 %v2448_v28  ;;  %v2457_v53 = vadd.bf16 1065369472, %v3453_v25 }
 0x613   : > { %v3457_v42 = vpop.eup %3456  ;;  %3478 = vrcp.bf16 %v2449_v60  ;;  %v2458_v34 = vadd.bf16 1065369472, %v3455_v56 }
 0x614   : > { %v3459_v62 = vpop.eup %3458  ;;  %3480 = vrcp.bf16 %v2450_v17  ;;  %v2459_v37 = vadd.bf16 1065369472, %v3457_v42 }
 0x615   : > { %v3461_v27 = vpop.eup %3460  ;;  %3482 = vrcp.bf16 %v2451_v8  ;;  %v2460_v29 = vadd.bf16 1065369472, %v3459_v62 }
 0x616   : > { %v3463_v52 = vpop.eup %3462  ;;  %3484 = vrcp.bf16 %v2452_v50  ;;  %v2461_v1 = vadd.bf16 1065369472, %v3461_v27 }
 0x617   : > { %v3465_v54 = vpop.eup %3464  ;;  %3486 = vrcp.bf16 %v2453_v44  ;;  %v2462_v43 = vadd.bf16 1065369472, %v3463_v52 }
 0x618   : > { %v3467_v7 = vpop.eup %3466  ;;  %3488 = vrcp.bf16 %v2454_v41  ;;  %v2463_v59 = vadd.bf16 1065369472, %v3465_v54 }
 0x619   : > { %v3469_v47 = vpop.eup %3468  ;;  %3490 = vrcp.bf16 %v2455_v12  ;;  %v2464_v11 = vadd.bf16 1065369472, %v3467_v7 }
 0x61a   : > { %v3471_v0 = vpop.eup %3470  ;;  %3492 = vrcp.bf16 %v2456_v51  ;;  %v2465_v55 = vadd.bf16 1065369472, %v3469_v47 }
 0x61b   : > { %v3473_v3 = vpop.eup %3472  ;;  %v2467_v33 = vmul.bf16 1065369472, %v3471_v0  ;;  %3494 = vrcp.bf16 %v2457_v53 }
 0x61c   : > { %v3475_v23 = vpop.eup %3474  ;;  %v2469_v19 = vmul.bf16 1065369472, %v3473_v3  ;;  %3496 = vrcp.bf16 %v2458_v34 }
 0x61d   : > { %v3477_v46 = vpop.eup %3476  ;;  %v2471_v26 = vmul.bf16 1065369472, %v3475_v23  ;;  %3498 = vrcp.bf16 %v2459_v37  ;;  %v2508_v22 = vmul.bf16 %v2467_v33, %v5313_v6 }
 0x61e   : > { %v3479_v4 = vpop.eup %3478  ;;  %v2473_v61 = vmul.bf16 1065369472, %v3477_v46  ;;  %3500 = vrcp.bf16 %v2460_v29  ;;  %v2509_v2 = vmul.bf16 %v2469_v19, %v5315_v15 }
 0x61f   : > { %v3481_v38 = vpop.eup %3480  ;;  %v2475_v16 = vmul.bf16 1065369472, %v3479_v4  ;;  %3502 = vrcp.bf16 %v2461_v1  ;;  %v2510_v36 = vmul.bf16 %v2471_v26, %v5317_v45  ;;  %v2872_v28 = vcombine.low %v2508_v22, %v2508_v22 }
 0x620   : > { %v3483_v21 = vpop.eup %3482  ;;  %v2477_v6 = vmul.bf16 1065369472, %v3481_v38  ;;  %3504 = vrcp.bf16 %v2462_v43  ;;  %v2511_v60 = vmul.bf16 %v2473_v61, %v5322_v9  ;;  %v2873_v63 = vcombine.high %v2508_v22, %v2508_v22 }
 0x621   : > { %v3485_v17 = vpop.eup %3484  ;;  %v2479_v25 = vmul.bf16 1065369472, %v3483_v21  ;;  %3506 = vrcp.bf16 %v2463_v59  ;;  %v2512_v15 = vmul.bf16 %v2475_v16, %v5327_v20  ;;  %v2874_v8 = vcombine.low %v2509_v2, %v2509_v2  ;;  %2673 = vst [vmem:[%s5406_s29] sm:$0xf] %v2872_v28 }
 0x622   : > { %v3487_v56 = vpop.eup %3486  ;;  %v2481_v50 = vmul.bf16 1065369472, %v3485_v17  ;;  %3508 = vrcp.bf16 %v2464_v11  ;;  %v2513_v45 = vmul.bf16 %v2477_v6, %v5332_v40  ;;  %v2875_v42 = vcombine.high %v2509_v2, %v2509_v2  ;;  %2674 = vst [vmem:[%s5406_s29 + $0x4] sm:$0xf] %v2873_v63 }
 0x623   : > { %v3489_v44 = vpop.eup %3488  ;;  %v2483_v62 = vmul.bf16 1065369472, %v3487_v56  ;;  %3510 = vrcp.bf16 %v2465_v55  ;;  %v2514_v9 = vmul.bf16 %v2479_v25, %v5334_v39  ;;  %v2876_v41 = vcombine.low %v2510_v36, %v2510_v36  ;;  %2675 = vst [vmem:[%s5406_s29 + $0x8] sm:$0xf] %v2874_v8 }
 0x624   : > { %v3491_v27 = vpop.eup %3490  ;;  %v2485_v20 = vmul.bf16 1065369472, %v3489_v44  ;;  %v2515_v12 = vmul.bf16 %v2481_v50, %v5341_v57  ;;  %v2877_v52 = vcombine.high %v2510_v36, %v2510_v36  ;;  %v2878_v51 = vcombine.low %v2511_v60, %v2511_v60  ;;  %2676 = vst [vmem:[%s5406_s29 + $0xc] sm:$0xf] %v2875_v42 }
 0x625   : > { %v3493_v40 = vpop.eup %3492  ;;  %v2487_v54 = vmul.bf16 1065369472, %v3491_v27  ;;  %v2516_v53 = vmul.bf16 %v2483_v62, %v5345_v14  ;;  %v2879_v7 = vcombine.high %v2511_v60, %v2511_v60  ;;  %v2880_v34 = vcombine.low %v2512_v15, %v2512_v15  ;;  %2677 = vst [vmem:[%s5406_s29 + $0x10] sm:$0xf] %v2876_v41 }
 0x626   : > { %v3495_v39 = vpop.eup %3494  ;;  %v2489_v47 = vmul.bf16 1065369472, %v3493_v40  ;;  %v2517_v37 = vmul.bf16 %v2485_v20, %v5349_v5  ;;  %v2881_v0 = vcombine.high %v2512_v15, %v2512_v15  ;;  %v2882_v57 = vcombine.low %v2513_v45, %v2513_v45  ;;  %2678 = vst [vmem:[%s5406_s29 + $0x14] sm:$0xf] %v2877_v52  ;;  %2679 = vst [vmem:[%s5406_s29 + $0x18] sm:$0xf] %v2878_v51 }
 0x627   : > { %v3497_v29 = vpop.eup %3496  ;;  %v2491_v3 = vmul.bf16 1065369472, %v3495_v39  ;;  %v2518_v1 = vmul.bf16 %v2487_v54, %v5353_v31  ;;  %v2883_v14 = vcombine.high %v2513_v45, %v2513_v45  ;;  %v2884_v33 = vcombine.low %v2514_v9, %v2514_v9  ;;  %2680 = vst [vmem:[%s5406_s29 + $0x1c] sm:$0xf] %v2879_v7  ;;  %2681 = vst [vmem:[%s5406_s29 + $0x20] sm:$0xf] %v2880_v34 }
 0x628   : > { %v3499_v23 = vpop.eup %3498  ;;  %v2493_v43 = vmul.bf16 1065369472, %v3497_v29  ;;  %v2519_v5 = vmul.bf16 %v2489_v47, %v5357_v48  ;;  %v2885_v59 = vcombine.high %v2514_v9, %v2514_v9  ;;  %v2886_v19 = vcombine.low %v2515_v12, %v2515_v12  ;;  %2682 = vst [vmem:[%s5406_s29 + $0x24] sm:$0xf] %v2881_v0  ;;  %2683 = vst [vmem:[%s5406_s29 + $0x28] sm:$0xf] %v2882_v57 }
 0x629   : > { %v3501_v46 = vpop.eup %3500  ;;  %v2495_v11 = vmul.bf16 1065369472, %v3499_v23  ;;  %v2520_v31 = vmul.bf16 %v2491_v3, %v5362_v13  ;;  %v2887_v26 = vcombine.high %v2515_v12, %v2515_v12  ;;  %v2888_v22 = vcombine.low %v2516_v53, %v2516_v53  ;;  %2684 = vst [vmem:[%s5406_s29 + $0x2c] sm:$0xf] %v2883_v14  ;;  %2685 = vst [vmem:[%s5406_s29 + $0x30] sm:$0xf] %v2884_v33 }
 0x62a   : > { %v3503_v4 = vpop.eup %3502  ;;  %v2497_v55 = vmul.bf16 1065369472, %v3501_v46  ;;  %v2521_v48 = vmul.bf16 %v2493_v43, %v5367_v18  ;;  %v2889_v61 = vcombine.high %v2516_v53, %v2516_v53  ;;  %v2890_v2 = vcombine.low %v2517_v37, %v2517_v37  ;;  %2686 = vst [vmem:[%s5406_s29 + $0x34] sm:$0xf] %v2885_v59  ;;  %2687 = vst [vmem:[%s5406_s29 + $0x38] sm:$0xf] %v2886_v19 }
 0x62b   : > { %v3505_v38 = vpop.eup %3504  ;;  %v2499_v16 = vmul.bf16 1065369472, %v3503_v4  ;;  %v2522_v13 = vmul.bf16 %v2495_v11, %v5372_v58  ;;  %v2891_v36 = vcombine.high %v2517_v37, %v2517_v37  ;;  %v2892_v28 = vcombine.low %v2518_v1, %v2518_v1  ;;  %2688 = vst [vmem:[%s5406_s29 + $0x3c] sm:$0xf] %v2887_v26  ;;  %2689 = vst [vmem:[%s5406_s29 + $0x40] sm:$0xf] %v2888_v22 }
 0x62c   : > { %v3507_v21 = vpop.eup %3506  ;;  %v2501_v6 = vmul.bf16 1065369472, %v3505_v38  ;;  %v2523_v18 = vmul.bf16 %v2497_v55, %v5377_v35  ;;  %v2893_v60 = vcombine.high %v2518_v1, %v2518_v1  ;;  %v2894_v63 = vcombine.low %v2519_v5, %v2519_v5  ;;  %2690 = vst [vmem:[%s5406_s29 + $0x44] sm:$0xf] %v2889_v61  ;;  %2691 = vst [vmem:[%s5406_s29 + $0x48] sm:$0xf] %v2890_v2 }
 0x62d   : > { %v3509_v17 = vpop.eup %3508  ;;  %v2503_v25 = vmul.bf16 1065369472, %v3507_v21  ;;  %v2524_v58 = vmul.bf16 %v2499_v16, %v5382_v49  ;;  %v2895_v15 = vcombine.high %v2519_v5, %v2519_v5  ;;  %v2896_v8 = vcombine.low %v2520_v31, %v2520_v31  ;;  %2692 = vst [vmem:[%s5406_s29 + $0x4c] sm:$0xf] %v2891_v36  ;;  %2693 = vst [vmem:[%s5406_s29 + $0x50] sm:$0xf] %v2892_v28 }
 0x62e   : > { %v3511_v56 = vpop.eup %3510  ;;  %v2505_v50 = vmul.bf16 1065369472, %v3509_v17  ;;  %v2525_v35 = vmul.bf16 %v2501_v6, %v5385_v30  ;;  %v2897_v45 = vcombine.high %v2520_v31, %v2520_v31  ;;  %v2898_v42 = vcombine.low %v2521_v48, %v2521_v48  ;;  %2694 = vst [vmem:[%s5406_s29 + $0x54] sm:$0xf] %v2893_v60  ;;  %2695 = vst [vmem:[%s5406_s29 + $0x58] sm:$0xf] %v2894_v63 }
 0x62f   : > { %v2507_v44 = vmul.bf16 1065369472, %v3511_v56  ;;  %v2526_v49 = vmul.bf16 %v2503_v25, %v5388_v24  ;;  %v2899_v62 = vcombine.high %v2521_v48, %v2521_v48  ;;  %v2900_v9 = vcombine.low %v2522_v13, %v2522_v13  ;;  %2696 = vst [vmem:[%s5406_s29 + $0x5c] sm:$0xf] %v2895_v15  ;;  %2697 = vst [vmem:[%s5406_s29 + $0x60] sm:$0xf] %v2896_v8 }
 0x630   : > { %v2527_v41 = vmul.bf16 %v2505_v50, %v5391_v10  ;;  %v2901_v27 = vcombine.high %v2522_v13, %v2522_v13  ;;  %v2902_v30 = vcombine.low %v2523_v18, %v2523_v18  ;;  %v2903_v20 = vcombine.high %v2523_v18, %v2523_v18  ;;  %2698 = vst [vmem:[%s5406_s29 + $0x64] sm:$0xf] %v2897_v45 }
 0x631   : > { %2699 = vst [vmem:[%s5406_s29 + $0x68] sm:$0xf] %v2898_v42  ;;  %v2528_v12 = vmul.bf16 %v2507_v44, %v5394_v32  ;;  %v2904_v24 = vcombine.low %v2524_v58, %v2524_v58  ;;  %v2905_v52 = vcombine.high %v2524_v58, %v2524_v58  ;;  %v2906_v51 = vcombine.low %v2525_v35, %v2525_v35 }
 0x632   : > { %2700 = vst [vmem:[%s5406_s29 + $0x6c] sm:$0xf] %v2899_v62  ;;  %2701 = vst [vmem:[%s5406_s29 + $0x70] sm:$0xf] %v2900_v9  ;;  %v2907_v10 = vcombine.high %v2525_v35, %v2525_v35  ;;  %v2908_v40 = vcombine.low %v2526_v49, %v2526_v49  ;;  %v2909_v54 = vcombine.high %v2526_v49, %v2526_v49 }
 0x633   : > { %v2910_v53 = vcombine.low %v2527_v41, %v2527_v41  ;;  %2702 = vst [vmem:[%s5406_s29 + $0x74] sm:$0xf] %v2901_v27  ;;  %2703 = vst [vmem:[%s5406_s29 + $0x78] sm:$0xf] %v2902_v30  ;;  %v2911_v32 = vcombine.high %v2527_v41, %v2527_v41  ;;  %v2912_v7 = vcombine.low %v2528_v12, %v2528_v12 }
 0x634   : > { %2704 = vst [vmem:[%s5406_s29 + $0x7c] sm:$0xf] %v2903_v20  ;;  %2705 = vst [vmem:[%s5406_s29 + $0x80] sm:$0xf] %v2904_v24 }
 0x635   : > { %2706 = vst [vmem:[%s5406_s29 + $0x84] sm:$0xf] %v2905_v52  ;;  %2707 = vst [vmem:[%s5406_s29 + $0x88] sm:$0xf] %v2906_v51 }
 0x636   : > { %2708 = vst [vmem:[%s5406_s29 + $0x8c] sm:$0xf] %v2907_v10  ;;  %2709 = vst [vmem:[%s5406_s29 + $0x90] sm:$0xf] %v2908_v40 }
 0x637   : > { %2710 = vst [vmem:[%s5406_s29 + $0x94] sm:$0xf] %v2909_v54  ;;  %2711 = vst [vmem:[%s5406_s29 + $0x98] sm:$0xf] %v2910_v53 }
 0x638   : > { %2712 = vst [vmem:[%s5406_s29 + $0x9c] sm:$0xf] %v2911_v32  ;;  %2713 = vst [vmem:[%s5406_s29 + $0xa0] sm:$0x3] %v2912_v7 }
 0x639 PF: > { %s16_s21 = sadd.s32 1, %s3518_s21  }
 0x63a   : > { %p13_p4 = scmp.ge.s32.totalorder %s16_s21, 4  }
 0x63c   :  { %15 = sbr.rel (!%p13_p4) target bundleno = 1 (0x1), region = 76 }

</bundles_post_ra>
